<compile_context>
chip_gen: v7x
topology: tpu7x:2x2x1
jax: 0.10.0
libtpu: 0.0.40
codegen_flags: <defaults>
</compile_context>

<pallas_src>
import functools

import jax
import jax.numpy as jnp
from jax import lax
from jax.experimental import pallas as pl
from jax.experimental.pallas import tpu as pltpu


# ----------------------------- Pallas kernels ------------------------------

def _conv_block_kernel(*refs, H, W, cin, cout, apply_act):
    if apply_act:
        (x_ref, w_ref, sc_ref, sh_ref,
         y_ref, sum_ref, ssq_ref, xp_ref, patch_ref) = refs
    else:
        (x_ref, w_ref,
         y_ref, sum_ref, ssq_ref, xp_ref, patch_ref) = refs
        sc_ref = sh_ref = None

    # Zero only the four halo strips (not the whole padded tile); the interior
    # is fully overwritten below.  Doing it every step (instead of once at
    # program_id==0) stays correct when the N axis is sharded across
    # TensorCores, where each core gets its own uninitialized scratch.
    zero_row = jnp.zeros((1, W + 2, cin), jnp.float32)
    zero_col = jnp.zeros((H + 2, 1, cin), jnp.float32)
    xp_ref[0:1, :, :] = zero_row
    xp_ref[H + 1:H + 2, :, :] = zero_row
    xp_ref[:, 0:1, :] = zero_col
    xp_ref[:, W + 1:W + 2, :] = zero_col

    x = x_ref[...].astype(jnp.float32).reshape(H, W, cin)
    if apply_act:
        # Fused previous-block BN + ReLU (per-channel affine broadcast over
        # H, W).  The halo stays exactly zero because it is never touched here.
        x = jnp.maximum(x * sc_ref[...] + sh_ref[...], 0.0)
    xp_ref[1:H + 1, 1:W + 1, :] = x

    # im2col: gather the 9 taps into one (H*W, 9*cin) patch matrix so the 3x3
    # conv becomes a single MXU matmul with contraction dim 9*cin (one result
    # drain instead of 9 small K=cin matmuls).
    for dy in range(3):
        for dx in range(3):
            k = (dy * 3 + dx) * cin
            patch_ref[:, k:k + cin] = (
                xp_ref[dy:dy + H, dx:dx + W, :].reshape(H * W, cin))

    acc = jnp.dot(patch_ref[...], w_ref[...],
                  preferred_element_type=jnp.float32)

    # Per-batch-element BN partial statistics (per output channel), taken from
    # the f32 accumulator so the conv output itself may be stored in bf16.
    sum_ref[...] = jnp.sum(acc, axis=0, keepdims=True)
    ssq_ref[...] = jnp.sum(acc * acc, axis=0, keepdims=True)

    y_ref[...] = acc.astype(y_ref.dtype)


def _bn_relu_kernel(y_ref, scale_ref, shift_ref, o_ref):
    # Lane-dense slab layout: y_ref / o_ref are (rows, W*C); scale/shift are
    # (1, W*C) (per-channel params tiled across W), so stores are full-width.
    z = y_ref[...].astype(jnp.float32) * scale_ref[...] + shift_ref[...]
    o_ref[...] = jnp.maximum(z, 0.0).astype(o_ref.dtype)


# ------------------------------- wrappers -----------------------------------

def conv_block_fused(x_flat, H, W, p, prev_scale=None, prev_shift=None,
                     out_dtype=jnp.float32, eps=1e-5):
    """One ConvBlock's 3x3 conv (+ optional fused previous-block BN/ReLU
    prologue) with in-kernel BN partial statistics.

    x_flat: (N, H*W, Cin) activations (row-major HWC, flattened per element).
    Returns (y_flat (N, H*W, Cout) in out_dtype, bn_scale, bn_shift) where
    bn_scale/shift are this block's training-mode BN affine.
    """
    N, HW, cin = x_flat.shape
    cout = p["w"].shape[-1]
    apply_act = prev_scale is not None
    # HWIO -> (kh*kw*cin, cout); row order matches the im2col column order.
    w2d = p["w"].reshape(9 * cin, cout)

    kernel = functools.partial(_conv_block_kernel, H=H, W=W, cin=cin,
                               cout=cout, apply_act=apply_act)

    in_specs = [
        pl.BlockSpec((pl.Squeezed(), HW, cin), lambda n: (n, 0, 0)),
        pl.BlockSpec((9 * cin, cout), lambda n: (0, 0)),
    ]
    args = [x_flat, w2d]
    if apply_act:
        in_specs += [pl.BlockSpec((1, cin), lambda n: (0, 0)),
                     pl.BlockSpec((1, cin), lambda n: (0, 0))]
        args += [prev_scale.reshape(1, cin).astype(jnp.float32),
                 prev_shift.reshape(1, cin).astype(jnp.float32)]

    y, sums, ssqs = pl.pallas_call(
        kernel,
        out_shape=(
            jax.ShapeDtypeStruct((N, HW, cout), out_dtype),
            jax.ShapeDtypeStruct((N, 1, cout), jnp.float32),
            jax.ShapeDtypeStruct((N, 1, cout), jnp.float32),
        ),
        grid=(N,),
        in_specs=in_specs,
        out_specs=(
            pl.BlockSpec((pl.Squeezed(), HW, cout), lambda n: (n, 0, 0)),
            pl.BlockSpec((pl.Squeezed(), 1, cout), lambda n: (n, 0, 0)),
            pl.BlockSpec((pl.Squeezed(), 1, cout), lambda n: (n, 0, 0)),
        ),
        scratch_shapes=[
            pltpu.VMEM((H + 2, W + 2, cin), jnp.float32),   # padded input tile
            pltpu.VMEM((HW, 9 * cin), jnp.float32),          # im2col patches
        ],
        compiler_params=pltpu.CompilerParams(
            dimension_semantics=("parallel",)),
    )(*args)

    # Finalize training-mode BN (batch mean, biased variance) from the
    # in-kernel partial sums; the conv bias is dropped because batch-stat BN
    # cancels a constant per-channel bias exactly.
    count = N * HW
    mean = jnp.sum(sums, axis=(0, 1)) / count
    ex2 = jnp.sum(ssqs, axis=(0, 1)) / count
    # TODO(synk): use a shifted / Welford-style accumulation at real channel
    # counts if |mean| >> std makes E[x^2] - mean^2 cancel badly in f32.
    var = ex2 - mean * mean
    scale = p["gamma"] * lax.rsqrt(var + eps)
    shift = p["beta"] - mean * scale
    return y, scale, shift


def bn_relu(y_flat, scale, shift, W):
    """Per-channel affine + ReLU on (N, H*W, C), done on a lane-dense
    (N*H, W*C) slab in as few (large) blocks as possible."""
    N, HW, C = y_flat.shape
    H = HW // W
    rows, wc = N * H, W * C
    y2 = y_flat.reshape(rows, wc)                          # contiguous -> free
    sc = jnp.tile(scale.astype(jnp.float32), W).reshape(1, wc)
    sh = jnp.tile(shift.astype(jnp.float32), W).reshape(1, wc)

    # One big block when it fits comfortably in VMEM (removes per-step overhead
    # and the repeated scale/shift DMA); otherwise chunk by H rows.
    block_rows = rows if rows * wc * 4 <= (16 << 20) else H

    out = pl.pallas_call(
        _bn_relu_kernel,
        out_shape=jax.ShapeDtypeStruct((rows, wc), jnp.float32),
        grid=(rows // block_rows,),
        in_specs=[
            pl.BlockSpec((block_rows, wc), lambda r: (r, 0)),
            pl.BlockSpec((1, wc), lambda r: (0, 0)),
            pl.BlockSpec((1, wc), lambda r: (0, 0)),
        ],
        out_specs=pl.BlockSpec((block_rows, wc), lambda r: (r, 0)),
        compiler_params=pltpu.CompilerParams(
            dimension_semantics=("parallel",)),
    )(y2, sc, sh)
    return out.reshape(N, HW, C)


def bridge_forward(x_nchw, params, eps=1e-5):
    """Bridge.forward: NCHW in, NCHW out (internally HWC slabs)."""
    N, Cin, H, W = x_nchw.shape
    C1 = params["block1"]["w"].shape[-1]
    # NCHW -> NHWC -> (N, H*W, Cin).
    # TODO(synk): fold these boundary transposes into the kernels (channel-major
    # padded scratch / channel-major bn_relu output) if the caller cannot accept
    # NHWC directly.
    x = jnp.transpose(x_nchw, (0, 2, 3, 1)).reshape(N, H * W, Cin)

    # Block 1: conv + in-kernel BN partial stats; the inter-block activation is
    # written in bf16 (block 2 upcasts; stats already come from the f32 acc).
    y1, sc1, sh1 = conv_block_fused(x, H, W, params["block1"],
                                    out_dtype=jnp.bfloat16, eps=eps)
    # Block 2: block 1's BN+ReLU fused into the input prologue.
    y2, sc2, sh2 = conv_block_fused(y1, H, W, params["block2"],
                                    prev_scale=sc1, prev_shift=sh1, eps=eps)
    # Final BN + ReLU on one lane-dense slab.
    out = bn_relu(y2, sc2, sh2, W)                         # (N, H*W, C1) f32
    return jnp.transpose(out.reshape(N, H, W, C1), (0, 3, 1, 2))


# --------------------------- parameter construction --------------------------

def make_conv_block_params(key, cin, cout):
    k1, k2, k3, k4 = jax.random.split(key, 4)
    return {
        "w": 0.1 * jax.random.normal(k1, (3, 3, cin, cout), jnp.float32),
        # Conv bias kept for spec fidelity; it cancels under train-mode BN and
        # is therefore only used in the exact pure-JAX reference below.
        "b": 0.1 * jax.random.normal(k2, (cout,), jnp.float32),
        "gamma": 1.0 + 0.1 * jax.random.normal(k3, (cout,), jnp.float32),
        "beta": 0.1 * jax.random.normal(k4, (cout,), jnp.float32),
    }


def make_bridge_params(key, in_channels, out_channels):
    k1, k2 = jax.random.split(key)
    return {
        "block1": make_conv_block_params(k1, in_channels, out_channels),
        "block2": make_conv_block_params(k2, out_channels, out_channels),
    }


# ------------------------------ pure-JAX references --------------------------

def _ref_conv_block(x, p, eps=1e-5):
    y = lax.conv_general_dilated(
        x, p["w"], window_strides=(1, 1), padding="SAME",
        dimension_numbers=("NHWC", "HWIO", "NHWC")) + p["b"]
    mean = jnp.mean(y, axis=(0, 1, 2))
    var = jnp.var(y, axis=(0, 1, 2))
    yhat = (y - mean) * lax.rsqrt(var + eps)
    return jnp.maximum(yhat * p["gamma"] + p["beta"], 0.0)


def _ref_bridge(x_nchw, params):
    """Exact f32 PyTorch-style reference (Conv+bias -> train-mode BN -> ReLU, twice)."""
    x = jnp.transpose(x_nchw, (0, 2, 3, 1))
    x = _ref_conv_block(x, params["block1"])
    x = _ref_conv_block(x, params["block2"])
    return jnp.transpose(x, (0, 3, 1, 2))


def _ref_bridge_kernel_math(x_nchw, params, eps=1e-5):
    """Reference that mirrors the kernel's math exactly: bias cancelled under
    batch-stat BN, bf16 inter-block activation, E[x^2]-m^2 variance."""
    p1, p2 = params["block1"], params["block2"]
    x = jnp.transpose(x_nchw, (0, 2, 3, 1))
    y1 = lax.conv_general_dilated(
        x, p1["w"], (1, 1), "SAME", dimension_numbers=("NHWC", "HWIO", "NHWC"))
    m1 = jnp.mean(y1, axis=(0, 1, 2))
    v1 = jnp.mean(y1 * y1, axis=(0, 1, 2)) - m1 * m1
    s1 = p1["gamma"] * lax.rsqrt(v1 + eps)
    b1 = p1["beta"] - m1 * s1
    a1 = jnp.maximum(y1.astype(jnp.bfloat16).astype(jnp.float32) * s1 + b1, 0.0)
    y2 = lax.conv_general_dilated(
        a1, p2["w"], (1, 1), "SAME", dimension_numbers=("NHWC", "HWIO", "NHWC"))
    m2 = jnp.mean(y2, axis=(0, 1, 2))
    v2 = jnp.mean(y2 * y2, axis=(0, 1, 2)) - m2 * m2
    s2 = p2["gamma"] * lax.rsqrt(v2 + eps)
    b2 = p2["beta"] - m2 * s2
    out = jnp.maximum(y2 * s2 + b2, 0.0)
    return jnp.transpose(out, (0, 3, 1, 2))


# ----------------------------------- main ------------------------------------

if __name__ == "__main__":
    key = jax.random.PRNGKey(0)
    kx, kp = jax.random.split(key)

    N, Cin, H, W = 2, 4, 16, 16
    Cout = 8
    x = jax.random.normal(kx, (N, Cin, H, W), jnp.float32)   # NCHW like PyTorch
    params = make_bridge_params(kp, Cin, Cout)

    out = jax.block_until_ready(bridge_forward(x, params))
    assert out.shape == (N, Cout, H, W)

    # (1) Tight check against a reference that mirrors the kernel math
    #     (bias cancellation + bf16 inter-block activation).
    ref_k = jax.block_until_ready(_ref_bridge_kernel_math(x, params))
    assert jnp.allclose(out, ref_k, atol=5e-3, rtol=5e-3), \
        "mismatch vs kernel-math reference"

    # (2) Looser check against the exact f32 PyTorch-style reference; the only
    #     intended deviation is the bf16 rounding of the inter-block activation.
    ref = jax.block_until_ready(_ref_bridge(x, params))
    assert jnp.allclose(out, ref, atol=2e-2, rtol=2e-2), \
        "mismatch vs exact f32 reference"

    print("KERNEL_OK")
</pallas_src>

<mosaic_0001>
module attributes {stable_mosaic.version = 11 : i64} {
  func.func @_conv_block_kernel(%arg0: i32, %arg1: memref<1x256x4xf32, #tpu.memory_space<vmem>>, %arg2: memref<36x8xf32, #tpu.memory_space<vmem>>, %arg3: memref<1x256x8xbf16, #tpu.memory_space<vmem>>, %arg4: memref<1x1x8xf32, #tpu.memory_space<vmem>>, %arg5: memref<1x1x8xf32, #tpu.memory_space<vmem>>, %arg6: memref<18x18x4xf32, #tpu.memory_space<vmem>>, %arg7: memref<256x36xf32, #tpu.memory_space<vmem>>) attributes {dimension_semantics = [#tpu.dimension_semantics<parallel>], iteration_bounds = array<i64: 2>, scalar_prefetch = 0 : i64, scratch_operands = 2 : i64, tpu.core_type = #tpu.core_type<tc>, window_params = [{transform_indices = @transform_0, window_bounds = array<i64: 1, 256, 4>}, {pipeline_mode = #tpu.pipeline_mode<synchronous>, transform_indices = @transform_1, window_bounds = array<i64: 36, 8>}, {transform_indices = @transform_2, window_bounds = array<i64: 1, 256, 8>}, {transform_indices = @transform_3, window_bounds = array<i64: 1, 1, 8>}, {transform_indices = @transform_4, window_bounds = array<i64: 1, 1, 8>}]} {
    %cst = arith.constant 0.000000e+00 : f32
    %0 = vector.broadcast %cst : f32 to vector<1x18x4xf32>
    %cst_0 = arith.constant 0.000000e+00 : f32
    %1 = vector.broadcast %cst_0 : f32 to vector<18x1x4xf32>
    %c0 = arith.constant 0 : index
    %c0_1 = arith.constant 0 : index
    %c0_2 = arith.constant 0 : index
    %2 = vector.load %arg6[%c0, %c0_1, %c0_2] : memref<18x18x4xf32, #tpu.memory_space<vmem>>, vector<1x18x4xf32>
    tpu.vector_store %arg6[%c0, %c0_1, %c0_2], %0 {strides = array<i32>} : memref<18x18x4xf32, #tpu.memory_space<vmem>>, vector<1x18x4xf32>,
    %c17 = arith.constant 17 : index
    %c0_3 = arith.constant 0 : index
    %c0_4 = arith.constant 0 : index
    %3 = vector.load %arg6[%c17, %c0_3, %c0_4] : memref<18x18x4xf32, #tpu.memory_space<vmem>>, vector<1x18x4xf32>
    tpu.vector_store %arg6[%c17, %c0_3, %c0_4], %0 {strides = array<i32>} : memref<18x18x4xf32, #tpu.memory_space<vmem>>, vector<1x18x4xf32>,
    %c0_5 = arith.constant 0 : index
    %c0_6 = arith.constant 0 : index
    %c0_7 = arith.constant 0 : index
    %4 = vector.load %arg6[%c0_5, %c0_6, %c0_7] : memref<18x18x4xf32, #tpu.memory_space<vmem>>, vector<18x1x4xf32>
    tpu.vector_store %arg6[%c0_5, %c0_6, %c0_7], %1 {strides = array<i32>} : memref<18x18x4xf32, #tpu.memory_space<vmem>>, vector<18x1x4xf32>,
    %c0_8 = arith.constant 0 : index
    %c17_9 = arith.constant 17 : index
    %c0_10 = arith.constant 0 : index
    %5 = vector.load %arg6[%c0_8, %c17_9, %c0_10] : memref<18x18x4xf32, #tpu.memory_space<vmem>>, vector<18x1x4xf32>
    tpu.vector_store %arg6[%c0_8, %c17_9, %c0_10], %1 {strides = array<i32>} : memref<18x18x4xf32, #tpu.memory_space<vmem>>, vector<18x1x4xf32>,
    %c0_11 = arith.constant 0 : index
    %c0_12 = arith.constant 0 : index
    %c0_13 = arith.constant 0 : index
    %6 = vector.load %arg1[%c0_11, %c0_12, %c0_13] : memref<1x256x4xf32, #tpu.memory_space<vmem>>, vector<1x256x4xf32>
    %7 = vector.shape_cast %6 : vector<1x256x4xf32> to vector<256x4xf32>
    %8 = vector.shape_cast %7 : vector<256x4xf32> to vector<16x16x4xf32>
    %c1 = arith.constant 1 : index
    %c1_14 = arith.constant 1 : index
    %c0_15 = arith.constant 0 : index
    %9 = vector.load %arg6[%c1, %c1_14, %c0_15] : memref<18x18x4xf32, #tpu.memory_space<vmem>>, vector<16x16x4xf32>
    tpu.vector_store %arg6[%c1, %c1_14, %c0_15], %8 {strides = array<i32>} : memref<18x18x4xf32, #tpu.memory_space<vmem>>, vector<16x16x4xf32>,
    %c0_16 = arith.constant 0 : index
    %c0_17 = arith.constant 0 : index
    %c0_18 = arith.constant 0 : index
    %10 = vector.load %arg6[%c0_16, %c0_17, %c0_18] : memref<18x18x4xf32, #tpu.memory_space<vmem>>, vector<16x16x4xf32>
    %11 = vector.shape_cast %10 : vector<16x16x4xf32> to vector<256x4xf32>
    %c0_19 = arith.constant 0 : index
    %c0_20 = arith.constant 0 : index
    %12 = vector.load %arg7[%c0_19, %c0_20] : memref<256x36xf32, #tpu.memory_space<vmem>>, vector<256x4xf32>
    tpu.vector_store %arg7[%c0_19, %c0_20], %11 {strides = array<i32>} : memref<256x36xf32, #tpu.memory_space<vmem>>, vector<256x4xf32>,
    %c0_21 = arith.constant 0 : index
    %c1_22 = arith.constant 1 : index
    %c0_23 = arith.constant 0 : index
    %13 = vector.load %arg6[%c0_21, %c1_22, %c0_23] : memref<18x18x4xf32, #tpu.memory_space<vmem>>, vector<16x16x4xf32>
    %14 = vector.shape_cast %13 : vector<16x16x4xf32> to vector<256x4xf32>
    %c0_24 = arith.constant 0 : index
    %c4 = arith.constant 4 : index
    %15 = vector.load %arg7[%c0_24, %c4] : memref<256x36xf32, #tpu.memory_space<vmem>>, vector<256x4xf32>
    tpu.vector_store %arg7[%c0_24, %c4], %14 {strides = array<i32>} : memref<256x36xf32, #tpu.memory_space<vmem>>, vector<256x4xf32>,
    %c0_25 = arith.constant 0 : index
    %c2 = arith.constant 2 : index
    %c0_26 = arith.constant 0 : index
    %16 = vector.load %arg6[%c0_25, %c2, %c0_26] : memref<18x18x4xf32, #tpu.memory_space<vmem>>, vector<16x16x4xf32>
    %17 = vector.shape_cast %16 : vector<16x16x4xf32> to vector<256x4xf32>
    %c0_27 = arith.constant 0 : index
    %c8 = arith.constant 8 : index
    %18 = vector.load %arg7[%c0_27, %c8] : memref<256x36xf32, #tpu.memory_space<vmem>>, vector<256x4xf32>
    tpu.vector_store %arg7[%c0_27, %c8], %17 {strides = array<i32>} : memref<256x36xf32, #tpu.memory_space<vmem>>, vector<256x4xf32>,
    %c1_28 = arith.constant 1 : index
    %c0_29 = arith.constant 0 : index
    %c0_30 = arith.constant 0 : index
    %19 = vector.load %arg6[%c1_28, %c0_29, %c0_30] : memref<18x18x4xf32, #tpu.memory_space<vmem>>, vector<16x16x4xf32>
    %20 = vector.shape_cast %19 : vector<16x16x4xf32> to vector<256x4xf32>
    %c0_31 = arith.constant 0 : index
    %c12 = arith.constant 12 : index
    %21 = vector.load %arg7[%c0_31, %c12] : memref<256x36xf32, #tpu.memory_space<vmem>>, vector<256x4xf32>
    tpu.vector_store %arg7[%c0_31, %c12], %20 {strides = array<i32>} : memref<256x36xf32, #tpu.memory_space<vmem>>, vector<256x4xf32>,
    %c1_32 = arith.constant 1 : index
    %c1_33 = arith.constant 1 : index
    %c0_34 = arith.constant 0 : index
    %22 = vector.load %arg6[%c1_32, %c1_33, %c0_34] : memref<18x18x4xf32, #tpu.memory_space<vmem>>, vector<16x16x4xf32>
    %23 = vector.shape_cast %22 : vector<16x16x4xf32> to vector<256x4xf32>
    %c0_35 = arith.constant 0 : index
    %c16 = arith.constant 16 : index
    %24 = vector.load %arg7[%c0_35, %c16] : memref<256x36xf32, #tpu.memory_space<vmem>>, vector<256x4xf32>
    tpu.vector_store %arg7[%c0_35, %c16], %23 {strides = array<i32>} : memref<256x36xf32, #tpu.memory_space<vmem>>, vector<256x4xf32>,
    %c1_36 = arith.constant 1 : index
    %c2_37 = arith.constant 2 : index
    %c0_38 = arith.constant 0 : index
    %25 = vector.load %arg6[%c1_36, %c2_37, %c0_38] : memref<18x18x4xf32, #tpu.memory_space<vmem>>, vector<16x16x4xf32>
    %26 = vector.shape_cast %25 : vector<16x16x4xf32> to vector<256x4xf32>
    %c0_39 = arith.constant 0 : index
    %c20 = arith.constant 20 : index
    %27 = vector.load %arg7[%c0_39, %c20] : memref<256x36xf32, #tpu.memory_space<vmem>>, vector<256x4xf32>
    tpu.vector_store %arg7[%c0_39, %c20], %26 {strides = array<i32>} : memref<256x36xf32, #tpu.memory_space<vmem>>, vector<256x4xf32>,
    %c2_40 = arith.constant 2 : index
    %c0_41 = arith.constant 0 : index
    %c0_42 = arith.constant 0 : index
    %28 = vector.load %arg6[%c2_40, %c0_41, %c0_42] : memref<18x18x4xf32, #tpu.memory_space<vmem>>, vector<16x16x4xf32>
    %29 = vector.shape_cast %28 : vector<16x16x4xf32> to vector<256x4xf32>
    %c0_43 = arith.constant 0 : index
    %c24 = arith.constant 24 : index
    %30 = vector.load %arg7[%c0_43, %c24] : memref<256x36xf32, #tpu.memory_space<vmem>>, vector<256x4xf32>
    tpu.vector_store %arg7[%c0_43, %c24], %29 {strides = array<i32>} : memref<256x36xf32, #tpu.memory_space<vmem>>, vector<256x4xf32>,
    %c2_44 = arith.constant 2 : index
    %c1_45 = arith.constant 1 : index
    %c0_46 = arith.constant 0 : index
    %31 = vector.load %arg6[%c2_44, %c1_45, %c0_46] : memref<18x18x4xf32, #tpu.memory_space<vmem>>, vector<16x16x4xf32>
    %32 = vector.shape_cast %31 : vector<16x16x4xf32> to vector<256x4xf32>
    %c0_47 = arith.constant 0 : index
    %c28 = arith.constant 28 : index
    %33 = vector.load %arg7[%c0_47, %c28] : memref<256x36xf32, #tpu.memory_space<vmem>>, vector<256x4xf32>
    tpu.vector_store %arg7[%c0_47, %c28], %32 {strides = array<i32>} : memref<256x36xf32, #tpu.memory_space<vmem>>, vector<256x4xf32>,
    %c2_48 = arith.constant 2 : index
    %c2_49 = arith.constant 2 : index
    %c0_50 = arith.constant 0 : index
    %34 = vector.load %arg6[%c2_48, %c2_49, %c0_50] : memref<18x18x4xf32, #tpu.memory_space<vmem>>, vector<16x16x4xf32>
    %35 = vector.shape_cast %34 : vector<16x16x4xf32> to vector<256x4xf32>
    %c0_51 = arith.constant 0 : index
    %c32 = arith.constant 32 : index
    %36 = vector.load %arg7[%c0_51, %c32] : memref<256x36xf32, #tpu.memory_space<vmem>>, vector<256x4xf32>
    tpu.vector_store %arg7[%c0_51, %c32], %35 {strides = array<i32>} : memref<256x36xf32, #tpu.memory_space<vmem>>, vector<256x4xf32>,
    %c0_52 = arith.constant 0 : index
    %c0_53 = arith.constant 0 : index
    %37 = vector.load %arg7[%c0_52, %c0_53] : memref<256x36xf32, #tpu.memory_space<vmem>>, vector<256x36xf32>
    %c0_54 = arith.constant 0 : index
    %c0_55 = arith.constant 0 : index
    %38 = vector.load %arg2[%c0_54, %c0_55] : memref<36x8xf32, #tpu.memory_space<vmem>>, vector<36x8xf32>
    %cst_56 = arith.constant dense<0.000000e+00> : vector<256x8xf32>
    %39 = tpu.matmul %37, %38, %cst_56 {dimension_numbers = #tpu.dot_dimension_numbers<[1], [0], [0], [1], [0, 0, 1, 1], [], []>} : vector<256x36xf32>, vector<36x8xf32>, vector<256x8xf32> -> vector<256x8xf32>
    %cst_57 = arith.constant dense<0.000000e+00> : vector<8xf32>
    %40 = vector.multi_reduction <add>, %39, %cst_57 [0] : vector<256x8xf32> to vector<8xf32>
    %41 = vector.shape_cast %40 : vector<8xf32> to vector<1x8xf32>
    %c0_58 = arith.constant 0 : index
    %c0_59 = arith.constant 0 : index
    %c0_60 = arith.constant 0 : index
    %42 = vector.load %arg4[%c0_58, %c0_59, %c0_60] : memref<1x1x8xf32, #tpu.memory_space<vmem>>, vector<1x1x8xf32>
    %43 = vector.shape_cast %42 : vector<1x1x8xf32> to vector<1x8xf32>
    %44 = vector.shape_cast %41 : vector<1x8xf32> to vector<1x1x8xf32>
    tpu.vector_store %arg4[%c0_58, %c0_59, %c0_60], %44 {strides = array<i32>} : memref<1x1x8xf32, #tpu.memory_space<vmem>>, vector<1x1x8xf32>,
    %45 = arith.mulf %39, %39 : vector<256x8xf32>
    %cst_61 = arith.constant dense<0.000000e+00> : vector<8xf32>
    %46 = vector.multi_reduction <add>, %45, %cst_61 [0] : vector<256x8xf32> to vector<8xf32>
    %47 = vector.shape_cast %46 : vector<8xf32> to vector<1x8xf32>
    %c0_62 = arith.constant 0 : index
    %c0_63 = arith.constant 0 : index
    %c0_64 = arith.constant 0 : index
    %48 = vector.load %arg5[%c0_62, %c0_63, %c0_64] : memref<1x1x8xf32, #tpu.memory_space<vmem>>, vector<1x1x8xf32>
    %49 = vector.shape_cast %48 : vector<1x1x8xf32> to vector<1x8xf32>
    %50 = vector.shape_cast %47 : vector<1x8xf32> to vector<1x1x8xf32>
    tpu.vector_store %arg5[%c0_62, %c0_63, %c0_64], %50 {strides = array<i32>} : memref<1x1x8xf32, #tpu.memory_space<vmem>>, vector<1x1x8xf32>,
    %51 = arith.truncf %39 : vector<256x8xf32> to vector<256x8xbf16>
    %c0_65 = arith.constant 0 : index
    %c0_66 = arith.constant 0 : index
    %c0_67 = arith.constant 0 : index
    %52 = vector.load %arg3[%c0_65, %c0_66, %c0_67] : memref<1x256x8xbf16, #tpu.memory_space<vmem>>, vector<1x256x8xbf16>
    %53 = vector.shape_cast %52 : vector<1x256x8xbf16> to vector<256x8xbf16>
    %54 = vector.shape_cast %51 : vector<256x8xbf16> to vector<1x256x8xbf16>
    tpu.vector_store %arg3[%c0_65, %c0_66, %c0_67], %54 {strides = array<i32>} : memref<1x256x8xbf16, #tpu.memory_space<vmem>>, vector<1x256x8xbf16>,
    return
  }
  func.func @transform_0(%arg0: i32) -> (i32, i32, i32) {
    %c0_i32 = arith.constant 0 : i32
    %c0_i32_0 = arith.constant 0 : i32
    %c0_i32_1 = arith.constant 0 : i32
    return %arg0, %c0_i32, %c0_i32_0 : i32, i32, i32
  }
  func.func @transform_1(%arg0: i32) -> (i32, i32) {
    %c0_i32 = arith.constant 0 : i32
    %c0_i32_0 = arith.constant 0 : i32
    %c0_i32_1 = arith.constant 0 : i32
    return %c0_i32, %c0_i32_0 : i32, i32
  }
  func.func @transform_2(%arg0: i32) -> (i32, i32, i32) {
    %c0_i32 = arith.constant 0 : i32
    %c0_i32_0 = arith.constant 0 : i32
    %c0_i32_1 = arith.constant 0 : i32
    return %arg0, %c0_i32, %c0_i32_0 : i32, i32, i32
  }
  func.func @transform_3(%arg0: i32) -> (i32, i32, i32) {
    %c0_i32 = arith.constant 0 : i32
    %c0_i32_0 = arith.constant 0 : i32
    %c0_i32_1 = arith.constant 0 : i32
    return %arg0, %c0_i32, %c0_i32_0 : i32, i32, i32
  }
  func.func @transform_4(%arg0: i32) -> (i32, i32, i32) {
    %c0_i32 = arith.constant 0 : i32
    %c0_i32_0 = arith.constant 0 : i32
    %c0_i32_1 = arith.constant 0 : i32
    return %arg0, %c0_i32, %c0_i32_0 : i32, i32, i32
  }
}

</mosaic_0001>

<bundles_post_ra>
// kernel: tpu_custom_call.1
= control target key start
LH: loop header
LB: loop body
LE: loop exit
PB: predicated region body
PF: predicated region fallthrough
CT: control target
= control target key end

     0   :  { %10 = vsyncpa [#allocation5], 0  ;;  %s4427_s0 = inlined_call_operand.vmem [shape: f32[2,256,4], index: 0, kind: input, shape index: {}]   ;;  %s4428_s1 = inlined_call_operand.vmem [shape: f32[36,8], index: 1, kind: input, shape index: {}]   ;;  %s4429_s2 = inlined_call_operand.vmem [shape: bf16[2,256,8], index: 2, kind: output, shape index: {0}]   ;;  %s4430_s3 = inlined_call_operand.hbm [shape: f32[2,1,8], index: 3, kind: output, shape index: {1}]   ;;  %s4431_s4 = inlined_call_operand.hbm [shape: f32[2,1,8], index: 4, kind: output, shape index: {2}]  }
   0x1   :  { %12 = vsyncpa [#allocation5 + $0x1], 0 }
   0x2   :  { %13 = vsyncpa [#allocation7], 0 }
   0x3   :  { %15 = vsyncpa [#allocation7 + $0x1], 0  ;;  %s3186_s15 = smov 0   ;;  %s3188_s16 = smov 0  }
   0x4   :  { %s3190_s17 = smov 0   ;;  %s3192_s18 = smov 0  }
   0x5 LB: > { %s3207_s19 = sadd.s32 4294967295, %s3148_s18   ;;  %s2781_s20 = sadd.s32 4294967294, %s3148_s18   ;;  %s3148_s18 = sphi %s3192_s18, %s4437_s18   ;;  %s3144_s17 = sphi %s3190_s17, %s4436_s17   ;;  %s3140_s16 = sphi %s3188_s16, %s4435_s16   ;;  %s3136_s15 = sphi %s3186_s15, %s4434_s15  }
   0x6   : > { %s3211_s21 = sadd.s32 1, %s3148_s18   ;;  %s101_s22 = sadd.s32 1, %s3144_s17 }
   0x7   : > { %s98_s23 = ssub.s32 %s3148_s18, %s3211_s21  ;;  %p111_p0 = scmp.ne.s32.totalorder %s3144_s17, %s3140_s16 }
   0x8   : > { %p99_p1 = scmp.eq.s32.totalorder %s98_s23, 0  ;;  %p112_p2 = scmp.eq.s32.totalorder %s3207_s19, 1 }
   0x9   : > { %p117_p3 = scmp.ne.s32.totalorder %s3140_s16, %s3136_s15  ;;  %p118_p4 = scmp.eq.s32.totalorder %s2781_s20, 1 }
   0xa   : > { %s3222_s24 = scalar_select %p99_p1, %s3144_s17, %s101_s22  }
   0xb   : > { %p3224_p5 = por %p112_p2, %p111_p0  ;;  %p3228_p6 = por %p118_p4, %p117_p3 }
   0xc   : > { %p2784_p7 = scmp.ge.s32.totalorder %s3148_s18, 1  ;;  %p173_p8 = scmp.lt.s32.totalorder %s3148_s18, 3 }
   0xe   : > { %p174_p9 = pnand %p2784_p7, %p173_p8 }
   0xf   : > { %vm217_vm0 = vcmask (!%p174_p9), 31744   ;;  %vm226_vm1 = vcmask (!%p174_p9), 24576   ;;  %vm220_vm2 = vcmask (!%p174_p9), 25600   ;;  %p207_p10 = scmp.lt.s32.totalorder (!%p174_p9), %s3207_s19, 1  ;;  %v3150_v0 = vmov (!%p174_p9), 0.0   ;;  %s3151_s6 = smov (!%p174_p9), 4  }
  0x10   : > { %177 = sbr.rel (%p174_p9) target bundleno = 943 (0x3af), region = 28  ;;  %218 = vst.msk [vmem:[#allocation2] sm:$0xff] (!%p174_p9), %vm217_vm0, %v3150_v0  ;;  %219 = vst.msk [vmem:[#allocation2 + $0x8] sm:$0xff] (!%p174_p9), %vm217_vm0, %v3150_v0  ;;  %s3152_s7 = smov (!%p174_p9), 8   ;;  %vm552_vm3 = vcmask (!%p174_p9), 64544   ;;  %vm2071_vm4 = vcmask (!%p174_p9), 1043456  }
  0x11   : > { %223 = vst.msk [vmem:[#allocation2 + $0x198] sm:$0xff] (!%p174_p9), %vm217_vm0, %v3150_v0  ;;  %224 = vst.msk [vmem:[#allocation2 + $0x1a0] sm:$0xff] (!%p174_p9), %vm217_vm0, %v3150_v0  ;;  %s3153_s8 = smov (!%p174_p9), 12   ;;  %s3154_s9 = smov (!%p174_p9), 16   ;;  %vm745_vm5 = vcmask (!%p174_p9), 97344   ;;  %vm938_vm6 = vcmask (!%p174_p9), 130144  }
  0x12   : > { %228 = vst.msk [vmem:[#allocation2 + $0x18] sm:$0x1] (!%p174_p9), %vm226_vm1, %v3150_v0  ;;  %229 = vst.msk [vmem:[#allocation2 + $0x30] sm:$0x1] (!%p174_p9), %vm226_vm1, %v3150_v0  ;;  %s3155_s10 = smov (!%p174_p9), 20   ;;  %s3156_s11 = smov (!%p174_p9), 24  }
  0x13   : > { %230 = vst.msk [vmem:[#allocation2 + $0x48] sm:$0x1] (!%p174_p9), %vm226_vm1, %v3150_v0  ;;  %231 = vst.msk [vmem:[#allocation2 + $0x60] sm:$0x1] (!%p174_p9), %vm226_vm1, %v3150_v0  ;;  %s3157_s22 = smov (!%p174_p9), 28   ;;  %s3158_s12 = smov (!%p174_p9), 32  }
  0x14   : > { %232 = vst.msk [vmem:[#allocation2 + $0x78] sm:$0x1] (!%p174_p9), %vm226_vm1, %v3150_v0  ;;  %233 = vst.msk [vmem:[#allocation2 + $0x90] sm:$0x1] (!%p174_p9), %vm226_vm1, %v3150_v0  ;;  %vm1131_vm7 = vcmask (!%p174_p9), 162944   ;;  %vm1324_vm8 = vcmask (!%p174_p9), 195744  }
  0x15   : > { %234 = vst.msk [vmem:[#allocation2 + $0xa8] sm:$0x1] (!%p174_p9), %vm226_vm1, %v3150_v0  ;;  %235 = vst.msk [vmem:[#allocation2 + $0xc0] sm:$0x1] (!%p174_p9), %vm226_vm1, %v3150_v0  ;;  %vm1518_vm9 = vcmask (!%p174_p9), 228544   ;;  %vm1711_vm10 = vcmask (!%p174_p9), 261344  }
  0x16   : > { %236 = vst.msk [vmem:[#allocation2 + $0xd8] sm:$0x1] (!%p174_p9), %vm226_vm1, %v3150_v0  ;;  %237 = vst.msk [vmem:[#allocation2 + $0xf0] sm:$0x1] (!%p174_p9), %vm226_vm1, %v3150_v0  ;;  %vm1904_vm11 = vcmask (!%p174_p9), 294144   ;;  %vm1974_vm12 = vcmask (!%p174_p9), 293888  }
  0x17   : > { %238 = vst.msk [vmem:[#allocation2 + $0x108] sm:$0x1] %vm226_vm1, %v3150_v0  ;;  %239 = vst.msk [vmem:[#allocation2 + $0x120] sm:$0x1] %vm226_vm1, %v3150_v0  ;;  %s3279_s27 = scalar_select %p207_p10, %s3207_s19, 1  ;;  %v392_v7 = vld [vmem:[#allocation2 + $0x1] sm:$0xff] }
  0x18   : > { %240 = vst.msk [vmem:[#allocation2 + $0x138] sm:$0x1] %vm226_vm1, %v3150_v0  ;;  %241 = vst.msk [vmem:[#allocation2 + $0x150] sm:$0x1] %vm226_vm1, %v3150_v0  ;;  %456 = vrot.lane.b32.xlu0 %v392_v7, %s3151_s6  ;;  %v329_v46 = vld [vmem:[#allocation2 + $0x8] sm:$0xff]  ;;  %vm2300_vm13 = vcmask 64512  }
  0x19   : > { %242 = vst.msk [vmem:[#allocation2 + $0x168] sm:$0x1] %vm226_vm1, %v3150_v0  ;;  %243 = vst.msk [vmem:[#allocation2 + $0x180] sm:$0x1] %vm226_vm1, %v3150_v0  ;;  %s2858_s28 = sshll.u32 %s3279_s27, 8  ;;  %vm2602_vm14 = vcmask 60416  }
  0x1a   : > { %246 = vst.msk [vmem:[#allocation2 + $0x29] sm:$0x1] %vm226_vm1, %v3150_v0  ;;  %247 = vst.msk [vmem:[#allocation2 + $0x41] sm:$0x1] %vm226_vm1, %v3150_v0  ;;  %s3286_s5 = scalar_lea.vmem %s4427_s0, %s2858_s28  ;;  %vm2370_vm15 = vcmask 57344  }
  0x1b   : > { %248 = vst.msk [vmem:[#allocation2 + $0x59] sm:$0x1] %vm226_vm1, %v3150_v0  ;;  %249 = vst.msk [vmem:[#allocation2 + $0x71] sm:$0x1] %vm226_vm1, %v3150_v0  ;;  %v263_v1 = vld [vmem:[%s3286_s5] sm:$0xff]  ;;  %v265_v2 = vld [vmem:[%s3286_s5 + $0x10] sm:$0xff] }
  0x1c   : > { %250 = vst.msk [vmem:[#allocation2 + $0x89] sm:$0x1] %vm226_vm1, %v3150_v0  ;;  %251 = vst.msk [vmem:[#allocation2 + $0xa1] sm:$0x1] %vm226_vm1, %v3150_v0  ;;  %v264_v3 = vld [vmem:[%s3286_s5 + $0x8] sm:$0xff]  ;;  %v267_v4 = vld [vmem:[%s3286_s5 + $0x20] sm:$0xff] }
  0x1d   : > { %252 = vst.msk [vmem:[#allocation2 + $0xb9] sm:$0x1] %vm226_vm1, %v3150_v0  ;;  %253 = vst.msk [vmem:[#allocation2 + $0xd1] sm:$0x1] %vm226_vm1, %v3150_v0  ;;  %v266_v5 = vld [vmem:[%s3286_s5 + $0x18] sm:$0xff]  ;;  %v269_v6 = vld [vmem:[%s3286_s5 + $0x30] sm:$0xff] }
  0x1e   : > { %254 = vst.msk [vmem:[#allocation2 + $0xe9] sm:$0x1] %vm226_vm1, %v3150_v0  ;;  %255 = vst.msk [vmem:[#allocation2 + $0x101] sm:$0x1] %vm226_vm1, %v3150_v0  ;;  %v268_v9 = vld [vmem:[%s3286_s5 + $0x28] sm:$0xff]  ;;  %v271_v10 = vld [vmem:[%s3286_s5 + $0x40] sm:$0xff] }
  0x1f   : > { %256 = vst.msk [vmem:[#allocation2 + $0x119] sm:$0x1] %vm226_vm1, %v3150_v0  ;;  %257 = vst.msk [vmem:[#allocation2 + $0x131] sm:$0x1] %vm226_vm1, %v3150_v0  ;;  %v270_v11 = vld [vmem:[%s3286_s5 + $0x38] sm:$0xff]  ;;  %v273_v12 = vld [vmem:[%s3286_s5 + $0x50] sm:$0xff] }
  0x20   : > { %258 = vst.msk [vmem:[#allocation2 + $0x149] sm:$0x1] %vm226_vm1, %v3150_v0  ;;  %259 = vst.msk [vmem:[#allocation2 + $0x161] sm:$0x1] %vm226_vm1, %v3150_v0  ;;  %v272_v13 = vld [vmem:[%s3286_s5 + $0x48] sm:$0xff]  ;;  %v275_v14 = vld [vmem:[%s3286_s5 + $0x60] sm:$0xff] }
  0x21   : > { %260 = vst.msk [vmem:[#allocation2 + $0x179] sm:$0x1] %vm226_vm1, %v3150_v0  ;;  %261 = vst.msk [vmem:[#allocation2 + $0x191] sm:$0x1] %vm226_vm1, %v3150_v0  ;;  %v274_v15 = vld [vmem:[%s3286_s5 + $0x58] sm:$0xff]  ;;  %v277_v16 = vld [vmem:[%s3286_s5 + $0x70] sm:$0xff] }
  0x22   : > { %221 = vst.msk [vmem:[#allocation2 + $0x10] sm:$0x3] %vm220_vm2, %v3150_v0  ;;  %225 = vst.msk [vmem:[#allocation2 + $0x1a8] sm:$0x3] %vm220_vm2, %v3150_v0  ;;  %v276_v17 = vld [vmem:[%s3286_s5 + $0x68] sm:$0xff]  ;;  %v279_v18 = vld [vmem:[%s3286_s5 + $0x80] sm:$0xff] }
  0x23   : > { %227 = vst.msk [vmem:[#allocation2] sm:$0x1] %vm226_vm1, %v3150_v0  ;;  %244 = vst.msk [vmem:[#allocation2 + $0x198] sm:$0x1] %vm226_vm1, %v3150_v0  ;;  %v278_v19 = vld [vmem:[%s3286_s5 + $0x78] sm:$0xff]  ;;  %v281_v20 = vld [vmem:[%s3286_s5 + $0x90] sm:$0xff] }
  0x24   : > { %245 = vst.msk [vmem:[#allocation2 + $0x11] sm:$0x1] %vm226_vm1, %v3150_v0  ;;  %262 = vst.msk [vmem:[#allocation2 + $0x1a9] sm:$0x1] %vm226_vm1, %v3150_v0  ;;  %v280_v21 = vld [vmem:[%s3286_s5 + $0x88] sm:$0xff]  ;;  %v283_v22 = vld [vmem:[%s3286_s5 + $0xa0] sm:$0xff] }
  0x25   : > { %296 = vst.msk [vmem:[#allocation2 + $0x19] sm:$0xff] %vm217_vm0, %v263_v1  ;;  %298 = vst.msk [vmem:[#allocation2 + $0x31] sm:$0xff] %vm217_vm0, %v265_v2  ;;  %v282_v23 = vld [vmem:[%s3286_s5 + $0x98] sm:$0xff]  ;;  %v285_v24 = vld [vmem:[%s3286_s5 + $0xb0] sm:$0xff] }
  0x26   : > { %297 = vst.msk [vmem:[#allocation2 + $0x21] sm:$0xff] %vm217_vm0, %v264_v3  ;;  %300 = vst.msk [vmem:[#allocation2 + $0x49] sm:$0xff] %vm217_vm0, %v267_v4  ;;  %v284_v28 = vld [vmem:[%s3286_s5 + $0xa8] sm:$0xff]  ;;  %v287_v29 = vld [vmem:[%s3286_s5 + $0xc0] sm:$0xff] }
  0x27   : > { %299 = vst.msk [vmem:[#allocation2 + $0x39] sm:$0xff] %vm217_vm0, %v266_v5  ;;  %302 = vst.msk [vmem:[#allocation2 + $0x61] sm:$0xff] %vm217_vm0, %v269_v6  ;;  %v286_v33 = vld [vmem:[%s3286_s5 + $0xb8] sm:$0xff]  ;;  %v289_v34 = vld [vmem:[%s3286_s5 + $0xd0] sm:$0xff] }
  0x28   : > { %301 = vst.msk [vmem:[#allocation2 + $0x51] sm:$0xff] %vm217_vm0, %v268_v9  ;;  %304 = vst.msk [vmem:[#allocation2 + $0x79] sm:$0xff] %vm217_vm0, %v271_v10  ;;  %v288_v35 = vld [vmem:[%s3286_s5 + $0xc8] sm:$0xff]  ;;  %v291_v36 = vld [vmem:[%s3286_s5 + $0xe0] sm:$0xff] }
  0x29   : > { %v393_v8 = vld [vmem:[#allocation2 + $0x9] sm:$0xff]  ;;  %303 = vst.msk [vmem:[#allocation2 + $0x69] sm:$0xff] %vm217_vm0, %v270_v11  ;;  %306 = vst.msk [vmem:[#allocation2 + $0x91] sm:$0xff] %vm217_vm0, %v273_v12  ;;  %v290_v37 = vld [vmem:[%s3286_s5 + $0xd8] sm:$0xff] }
  0x2a   : > { %305 = vst.msk [vmem:[#allocation2 + $0x81] sm:$0xff] %vm217_vm0, %v272_v13  ;;  %308 = vst.msk [vmem:[#allocation2 + $0xa9] sm:$0xff] %vm217_vm0, %v275_v14  ;;  %458 = vrot.lane.b32.xlu0 %v393_v8, %s3151_s6  ;;  %v292_v39 = vld [vmem:[%s3286_s5 + $0xe8] sm:$0xff]  ;;  %v328_v45 = vld [vmem:[#allocation2] sm:$0xff] }
  0x2b   : > { %307 = vst.msk [vmem:[#allocation2 + $0x99] sm:$0xff] %vm217_vm0, %v274_v15  ;;  %310 = vst.msk [vmem:[#allocation2 + $0xc1] sm:$0xff] %vm217_vm0, %v277_v16 }
  0x2c   : > { %309 = vst.msk [vmem:[#allocation2 + $0xb1] sm:$0xff] %vm217_vm0, %v276_v17  ;;  %312 = vst.msk [vmem:[#allocation2 + $0xd9] sm:$0xff] %vm217_vm0, %v279_v18  ;;  %v3331_v25 = vld [vmem:[#allocation2 + $0x19] sm:$0xff]  ;;  %v3333_v26 = vld [vmem:[#allocation2 + $0x31] sm:$0xff] }
  0x2d   : > { %311 = vst.msk [vmem:[#allocation2 + $0xc9] sm:$0xff] %vm217_vm0, %v278_v19  ;;  %314 = vst.msk [vmem:[#allocation2 + $0xf1] sm:$0xff] %vm217_vm0, %v281_v20  ;;  %460 = vrot.lane.b32.xlu1 %v3331_v25, %s3151_s6  ;;  %v3340_v27 = vld [vmem:[#allocation2 + $0x21] sm:$0xff]  ;;  %v3348_v30 = vld [vmem:[#allocation2 + $0x49] sm:$0xff] }
  0x2e   : > { %313 = vst.msk [vmem:[#allocation2 + $0xe1] sm:$0xff] %vm217_vm0, %v280_v21  ;;  %316 = vst.msk [vmem:[#allocation2 + $0x109] sm:$0xff] %vm217_vm0, %v283_v22  ;;  %464 = vrot.lane.b32.xlu0 %v3333_v26, %s3151_s6  ;;  %v3352_v31 = vld [vmem:[#allocation2 + $0x39] sm:$0xff]  ;;  %v3356_v32 = vld [vmem:[#allocation2 + $0x61] sm:$0xff] }
  0x2f   : > { %315 = vst.msk [vmem:[#allocation2 + $0xf9] sm:$0xff] %vm217_vm0, %v282_v23  ;;  %318 = vst.msk [vmem:[#allocation2 + $0x121] sm:$0xff] %vm217_vm0, %v285_v24  ;;  %v3368_v38 = vld [vmem:[#allocation2 + $0x51] sm:$0xff]  ;;  %v3376_v40 = vld [vmem:[#allocation2 + $0x79] sm:$0xff] }
  0x30   : > { %317 = vst.msk [vmem:[#allocation2 + $0x111] sm:$0xff] %vm217_vm0, %v284_v28  ;;  %320 = vst.msk [vmem:[#allocation2 + $0x139] sm:$0xff] %vm217_vm0, %v287_v29  ;;  %v3380_v41 = vld [vmem:[#allocation2 + $0x69] sm:$0xff]  ;;  %v3384_v42 = vld [vmem:[#allocation2 + $0x91] sm:$0xff] }
  0x31   : > { %462 = vrot.lane.b32.xlu1 %v3340_v27, %s3151_s6  ;;  %319 = vst.msk [vmem:[#allocation2 + $0x129] sm:$0xff] %vm217_vm0, %v286_v33  ;;  %322 = vst.msk [vmem:[#allocation2 + $0x151] sm:$0xff] %vm217_vm0, %v289_v34  ;;  %v3388_v43 = vld [vmem:[#allocation2 + $0x81] sm:$0xff]  ;;  %v3392_v44 = vld [vmem:[#allocation2 + $0xa9] sm:$0xff] }
  0x32   : > { %468 = vrot.lane.b32.xlu0 %v3348_v30, %s3151_s6  ;;  %321 = vst.msk [vmem:[#allocation2 + $0x141] sm:$0xff] %vm217_vm0, %v288_v35  ;;  %324 = vst.msk [vmem:[#allocation2 + $0x169] sm:$0xff] %vm217_vm0, %v291_v36  ;;  %v3397_v47 = vld [vmem:[#allocation2 + $0x99] sm:$0xff]  ;;  %v3406_v49 = vld [vmem:[#allocation2 + $0x30] sm:$0xff] }
  0x33   : > { %323 = vst.msk [vmem:[#allocation2 + $0x159] sm:$0xff] %vm217_vm0, %v290_v37  ;;  %325 = vst.msk [vmem:[#allocation2 + $0x171] sm:$0xff] %vm217_vm0, %v292_v39  ;;  %v3400_v48 = vld [vmem:[#allocation2 + $0x18] sm:$0xff]  ;;  %v408_v50 = vld [vmem:[#allocation2 + $0xc1] sm:$0xff] }
  0x34   : > { %360 = vst.msk [vmem:[#allocation3] sm:$0xff] %vm217_vm0, %v328_v45  ;;  %361 = vst.msk [vmem:[#allocation3 + $0x8] sm:$0xff] %vm217_vm0, %v329_v46  ;;  %v3410_v51 = vld [vmem:[#allocation2 + $0x20] sm:$0xff]  ;;  %v3412_v52 = vld [vmem:[#allocation2 + $0x48] sm:$0xff] }
  0x35   : > { %466 = vrot.lane.b32.xlu1 %v3352_v31, %s3151_s6  ;;  %362 = vst.msk [vmem:[#allocation3 + $0x10] sm:$0xff] %vm217_vm0, %v3400_v48  ;;  %364 = vst.msk [vmem:[#allocation3 + $0x20] sm:$0xff] %vm217_vm0, %v3406_v49  ;;  %v3416_v53 = vld [vmem:[#allocation2 + $0xb1] sm:$0xff]  ;;  %v3424_v55 = vld [vmem:[#allocation2 + $0x60] sm:$0xff] }
  0x36   : > { %472 = vrot.lane.b32.xlu0 %v3356_v32, %s3151_s6  ;;  %363 = vst.msk [vmem:[#allocation3 + $0x18] sm:$0xff] %vm217_vm0, %v3410_v51  ;;  %366 = vst.msk [vmem:[#allocation3 + $0x30] sm:$0xff] %vm217_vm0, %v3412_v52  ;;  %v3422_v54 = vld [vmem:[#allocation2 + $0x38] sm:$0xff]  ;;  %v3430_v57 = vld [vmem:[#allocation2 + $0x50] sm:$0xff] }
  0x37   : > { %v410_v56 = vld [vmem:[#allocation2 + $0xd9] sm:$0xff]  ;;  %365 = vst.msk [vmem:[#allocation3 + $0x28] sm:$0xff] %vm217_vm0, %v3422_v54  ;;  %368 = vst.msk [vmem:[#allocation3 + $0x40] sm:$0xff] %vm217_vm0, %v3424_v55  ;;  %v3434_v59 = vld [vmem:[#allocation2 + $0x68] sm:$0xff] }
  0x38   : > { %v3432_v58 = vld [vmem:[#allocation2 + $0x78] sm:$0xff]  ;;  %367 = vst.msk [vmem:[#allocation3 + $0x38] sm:$0xff] %vm217_vm0, %v3430_v57  ;;  %369 = vst.msk [vmem:[#allocation3 + $0x48] sm:$0xff] %vm217_vm0, %v3434_v59  ;;  %v3443_v60 = vld [vmem:[#allocation2 + $0x90] sm:$0xff] }
  0x39   : > { %470 = vrot.lane.b32.xlu1 %v3368_v38, %s3151_s6  ;;  %370 = vst.msk [vmem:[#allocation3 + $0x50] sm:$0xff] %vm217_vm0, %v3432_v58  ;;  %v3445_v61 = vld [vmem:[#allocation2 + $0x80] sm:$0xff]  ;;  %v3447_v62 = vld [vmem:[#allocation2 + $0xa8] sm:$0xff]  ;;  %372 = vst.msk [vmem:[#allocation3 + $0x60] sm:$0xff] %vm217_vm0, %v3443_v60 }
  0x3a   : > { %476 = vrot.lane.b32.xlu0 %v3376_v40, %s3151_s6  ;;  %v409_v63 = vld [vmem:[#allocation2 + $0xc9] sm:$0xff]  ;;  %371 = vst.msk [vmem:[#allocation3 + $0x58] sm:$0xff] %vm217_vm0, %v3445_v61  ;;  %374 = vst.msk [vmem:[#allocation3 + $0x70] sm:$0xff] %vm217_vm0, %v3447_v62  ;;  %v3455_v0 = vld [vmem:[#allocation2 + $0x98] sm:$0xff] }
  0x3b   : > { %v3457_v1 = vld [vmem:[#allocation2 + $0xc0] sm:$0xff]  ;;  %v3459_v2 = vld [vmem:[#allocation2 + $0xb0] sm:$0xff]  ;;  %373 = vst.msk [vmem:[#allocation3 + $0x68] sm:$0xff] %vm217_vm0, %v3455_v0  ;;  %v3469_v3 = vld [vmem:[#allocation2 + $0xd8] sm:$0xff] }
  0x3c   : > { %376 = vst.msk [vmem:[#allocation3 + $0x80] sm:$0xff] %vm217_vm0, %v3457_v1  ;;  %375 = vst.msk [vmem:[#allocation3 + $0x78] sm:$0xff] %vm217_vm0, %v3459_v2  ;;  %v3471_v4 = vld [vmem:[#allocation2 + $0xc8] sm:$0xff]  ;;  %v3473_v5 = vld [vmem:[#allocation2 + $0xf0] sm:$0xff] }
  0x3d   : > { %474 = vrot.lane.b32.xlu1 %v3380_v41, %s3151_s6  ;;  %378 = vst.msk [vmem:[#allocation3 + $0x90] sm:$0xff] %vm217_vm0, %v3469_v3  ;;  %377 = vst.msk [vmem:[#allocation3 + $0x88] sm:$0xff] %vm217_vm0, %v3471_v4  ;;  %v3481_v6 = vld [vmem:[#allocation2 + $0xe0] sm:$0xff]  ;;  %v3483_v7 = vld [vmem:[#allocation2 + $0x108] sm:$0xff] }
  0x3e   : > { %480 = vrot.lane.b32.xlu0 %v3384_v42, %s3151_s6  ;;  %380 = vst.msk [vmem:[#allocation3 + $0xa0] sm:$0xff] %vm217_vm0, %v3473_v5  ;;  %v3485_v8 = vld [vmem:[#allocation2 + $0xf8] sm:$0xff]  ;;  %379 = vst.msk [vmem:[#allocation3 + $0x98] sm:$0xff] %vm217_vm0, %v3481_v6  ;;  %v3494_v9 = vld [vmem:[#allocation2 + $0x120] sm:$0xff] }
  0x3f   : > { %382 = vst.msk [vmem:[#allocation3 + $0xb0] sm:$0xff] %vm217_vm0, %v3483_v7  ;;  %381 = vst.msk [vmem:[#allocation3 + $0xa8] sm:$0xff] %vm217_vm0, %v3485_v8  ;;  %v3496_v10 = vld [vmem:[#allocation2 + $0x110] sm:$0xff]  ;;  %v354_v12 = vld [vmem:[#allocation2 + $0x138] sm:$0xff] }
  0x40   : > { %v412_v11 = vld [vmem:[#allocation2 + $0xf1] sm:$0xff]  ;;  %384 = vst.msk [vmem:[#allocation3 + $0xc0] sm:$0xff] %vm217_vm0, %v3494_v9  ;;  %383 = vst.msk [vmem:[#allocation3 + $0xb8] sm:$0xff] %vm217_vm0, %v3496_v10  ;;  %v411_v13 = vld [vmem:[#allocation2 + $0xe1] sm:$0xff] }
  0x41   : > { %478 = vrot.lane.b32.xlu1 %v3388_v43, %s3151_s6  ;;  %386 = vst.msk [vmem:[#allocation3 + $0xd0] sm:$0xff] %vm217_vm0, %v354_v12  ;;  %v3504_v14 = vld [vmem:[#allocation2 + $0x128] sm:$0xff]  ;;  %v356_v16 = vld [vmem:[#allocation2 + $0x150] sm:$0xff]  ;;  %v413_v17 = vld [vmem:[#allocation2 + $0xf9] sm:$0xff] }
  0x42   : > { %484 = vrot.lane.b32.xlu0 %v3392_v44, %s3151_s6  ;;  %385 = vst.msk [vmem:[#allocation3 + $0xc8] sm:$0xff] %vm217_vm0, %v3504_v14  ;;  %v414_v15 = vld [vmem:[#allocation2 + $0x109] sm:$0xff]  ;;  %388 = vst.msk [vmem:[#allocation3 + $0xe0] sm:$0xff] %vm217_vm0, %v356_v16  ;;  %v355_v18 = vld [vmem:[#allocation2 + $0x140] sm:$0xff] }
  0x43   : > { %387 = vst.msk [vmem:[#allocation3 + $0xd8] sm:$0xff] %vm217_vm0, %v355_v18  ;;  %v416_v19 = vld [vmem:[#allocation2 + $0x121] sm:$0xff]  ;;  %v415_v21 = vld [vmem:[#allocation2 + $0x111] sm:$0xff]  ;;  %v418_v23 = vld [vmem:[#allocation2 + $0x139] sm:$0xff] }
  0x44   : > { %v358_v20 = vld [vmem:[#allocation2 + $0x168] sm:$0xff]  ;;  %v357_v22 = vld [vmem:[#allocation2 + $0x158] sm:$0xff]  ;;  %v359_v28 = vld [vmem:[#allocation2 + $0x170] sm:$0xff] }
  0x45   : > { %482 = vrot.lane.b32.xlu1 %v3397_v47, %s3151_s6  ;;  %390 = vst.msk [vmem:[#allocation3 + $0xf0] sm:$0xff] %vm217_vm0, %v358_v20  ;;  %389 = vst.msk [vmem:[#allocation3 + $0xe8] sm:$0xff] %vm217_vm0, %v357_v22  ;;  %v417_v24 = vld [vmem:[#allocation2 + $0x129] sm:$0xff]  ;;  %v420_v29 = vld [vmem:[#allocation2 + $0x151] sm:$0xff] }
  0x46   : > { %488 = vrot.lane.b32.xlu0 %v408_v50, %s3151_s6  ;;  %391 = vst.msk [vmem:[#allocation3 + $0xf8] sm:$0xff] %vm217_vm0, %v359_v28  ;;  %v419_v33 = vld [vmem:[#allocation2 + $0x141] sm:$0xff]  ;;  %v422_v34 = vld [vmem:[#allocation2 + $0x169] sm:$0xff]  ;;  %v421_v35 = vld [vmem:[#allocation2 + $0x159] sm:$0xff] }
  0x47   : > { %v585_v36 = vld [vmem:[#allocation2 + $0x2] sm:$0xff]  ;;  %v423_v37 = vld [vmem:[#allocation2 + $0x171] sm:$0xff]  ;;  %v3526_v39 = vld [vmem:[#allocation2 + $0x1a] sm:$0xff] }
  0x48   : > { %v586_v45 = vld [vmem:[#allocation2 + $0xa] sm:$0xff]  ;;  %v3531_v46 = vld [vmem:[#allocation2 + $0x32] sm:$0xff]  ;;  %v3534_v50 = vld [vmem:[#allocation2 + $0x22] sm:$0xff] }
  0x49   : > { %486 = vrot.lane.b32.xlu1 %v3416_v53, %s3151_s6  ;;  %v3550_v12 = vld [vmem:[#allocation2 + $0x52] sm:$0xff]  ;;  %v3570_v18 = vld [vmem:[#allocation2 + $0xaa] sm:$0xff]  ;;  %v3578_v20 = vld [vmem:[#allocation2 + $0xc2] sm:$0xff] }
  0x4a   : > { %492 = vrot.lane.b32.xlu0 %v410_v56, %s3151_s6  ;;  %v3538_v56 = vld [vmem:[#allocation2 + $0x4a] sm:$0xff]  ;;  %v3562_v16 = vld [vmem:[#allocation2 + $0x92] sm:$0xff]  ;;  %v603_v22 = vld [vmem:[#allocation2 + $0xda] sm:$0xff] }
  0x4b   : > { %v604_v28 = vld [vmem:[#allocation2 + $0xe2] sm:$0xff] }
  0x4d   : > { %490 = vrot.lane.b32.xlu1 %v409_v63, %s3151_s6  ;;  %v3542_v63 = vld [vmem:[#allocation2 + $0x3a] sm:$0xff] }
  0x4e   : > { %496 = vrot.lane.b32.xlu0 %v412_v11, %s3151_s6  ;;  %v3546_v11 = vld [vmem:[#allocation2 + $0x62] sm:$0xff] }
  0x51   : > { %494 = vrot.lane.b32.xlu1 %v411_v13, %s3151_s6  ;;  %v3554_v13 = vld [vmem:[#allocation2 + $0x7a] sm:$0xff] }
  0x52   : > { %500 = vrot.lane.b32.xlu0 %v414_v15, %s3151_s6  ;;  %v3558_v15 = vld [vmem:[#allocation2 + $0x6a] sm:$0xff] }
  0x55   : > { %498 = vrot.lane.b32.xlu1 %v413_v17, %s3151_s6  ;;  %v3566_v17 = vld [vmem:[#allocation2 + $0x82] sm:$0xff] }
  0x56   : > { %504 = vrot.lane.b32.xlu0 %v416_v19, %s3151_s6  ;;  %v3574_v19 = vld [vmem:[#allocation2 + $0x9a] sm:$0xff] }
  0x59   : > { %502 = vrot.lane.b32.xlu1 %v415_v21, %s3151_s6  ;;  %v3582_v21 = vld [vmem:[#allocation2 + $0xb2] sm:$0xff] }
  0x5a   : > { %508 = vrot.lane.b32.xlu0 %v418_v23, %s3151_s6  ;;  %v3588_v23 = vld [vmem:[#allocation2 + $0xca] sm:$0xff] }
  0x5d   : > { %506 = vrot.lane.b32.xlu1 %v417_v24, %s3151_s6  ;;  %v605_v24 = vld [vmem:[#allocation2 + $0xf2] sm:$0xff] }
  0x5e   : > { %512 = vrot.lane.b32.xlu0 %v420_v29, %s3151_s6  ;;  %v607_v29 = vld [vmem:[#allocation2 + $0x10a] sm:$0xff] }
  0x61   : > { %510 = vrot.lane.b32.xlu1 %v419_v33, %s3151_s6  ;;  %v606_v33 = vld [vmem:[#allocation2 + $0xfa] sm:$0xff] }
  0x62   : > { %516 = vrot.lane.b32.xlu0 %v422_v34, %s3151_s6  ;;  %v609_v34 = vld [vmem:[#allocation2 + $0x122] sm:$0xff] }
  0x65   : > { %514 = vrot.lane.b32.xlu1 %v421_v35, %s3151_s6  ;;  %v608_v35 = vld [vmem:[#allocation2 + $0x112] sm:$0xff] }
  0x66   : > { %649 = vrot.lane.b32.xlu0 %v585_v36, %s3152_s7  ;;  %v611_v36 = vld [vmem:[#allocation2 + $0x13a] sm:$0xff] }
  0x69   : > { %518 = vrot.lane.b32.xlu1 %v423_v37, %s3151_s6 }
  0x6a   : > { %653 = vrot.lane.b32.xlu0 %v3526_v39, %s3152_s7 }
  0x6d   : > { %651 = vrot.lane.b32.xlu1 %v586_v45, %s3152_s7  ;;  %v610_v45 = vld [vmem:[#allocation2 + $0x12a] sm:$0xff] }
  0x6e   : > { %657 = vrot.lane.b32.xlu0 %v3531_v46, %s3152_s7 }
  0x71   : > { %655 = vrot.lane.b32.xlu1 %v3534_v50, %s3152_s7 }
  0x72   : > { %661 = vrot.lane.b32.xlu0 %v3538_v56, %s3152_s7 }
  0x75   : > { %659 = vrot.lane.b32.xlu1 %v3542_v63, %s3152_s7 }
  0x76   : > { %665 = vrot.lane.b32.xlu0 %v3546_v11, %s3152_s7 }
  0x79   : > { %663 = vrot.lane.b32.xlu1 %v3550_v12, %s3152_s7 }
  0x7a   : > { %669 = vrot.lane.b32.xlu0 %v3554_v13, %s3152_s7 }
  0x7d   : > { %667 = vrot.lane.b32.xlu1 %v3558_v15, %s3152_s7 }
  0x7e   : > { %673 = vrot.lane.b32.xlu0 %v3562_v16, %s3152_s7 }
  0x81   : > { %671 = vrot.lane.b32.xlu1 %v3566_v17, %s3152_s7 }
  0x82   : > { %677 = vrot.lane.b32.xlu0 %v3570_v18, %s3152_s7 }
  0x85   : > { %675 = vrot.lane.b32.xlu1 %v3574_v19, %s3152_s7 }
  0x86   : > { %681 = vrot.lane.b32.xlu0 %v3578_v20, %s3152_s7 }
  0x89   : > { %679 = vrot.lane.b32.xlu1 %v3582_v21, %s3152_s7 }
  0x8a   : > { %685 = vrot.lane.b32.xlu0 %v603_v22, %s3152_s7  ;;  %v457_v37 = vpop.permute.xlu0 %456  ;;  %v613_v22 = vld [vmem:[#allocation2 + $0x152] sm:$0xff] }
  0x8b   : > { %553 = vst.msk [vmem:[#allocation3] sm:$0xff] %vm552_vm3, %v457_v37 }
  0x8d   : > { %683 = vrot.lane.b32.xlu1 %v3588_v23, %s3152_s7 }
  0x8e   : > { %689 = vrot.lane.b32.xlu0 %v605_v24, %s3152_s7 }
  0x91   : > { %687 = vrot.lane.b32.xlu1 %v604_v28, %s3152_s7  ;;  %v612_v28 = vld [vmem:[#allocation2 + $0x142] sm:$0xff] }
  0x92   : > { %693 = vrot.lane.b32.xlu0 %v607_v29, %s3152_s7 }
  0x95   : > { %691 = vrot.lane.b32.xlu1 %v606_v33, %s3152_s7  ;;  %v615_v33 = vld [vmem:[#allocation2 + $0x16a] sm:$0xff] }
  0x96   : > { %697 = vrot.lane.b32.xlu0 %v609_v34, %s3152_s7 }
  0x99   : > { %695 = vrot.lane.b32.xlu1 %v608_v35, %s3152_s7  ;;  %v614_v35 = vld [vmem:[#allocation2 + $0x15a] sm:$0xff] }
  0x9a   : > { %701 = vrot.lane.b32.xlu0 %v611_v36, %s3152_s7 }
  0x9c   : > { %v459_v24 = vpop.permute.xlu0 %458 }
  0x9d   : > { %699 = vrot.lane.b32.xlu1 %v610_v45, %s3152_s7  ;;  %554 = vst.msk [vmem:[#allocation3 + $0x8] sm:$0xff] %vm552_vm3, %v459_v24  ;;  %v616_v45 = vld [vmem:[#allocation2 + $0x172] sm:$0xff] }
  0x9e   : > { %705 = vrot.lane.b32.xlu0 %v613_v22, %s3152_s7 }
  0x9f   : > { %v461_v29 = vpop.permute.xlu1 %460 }
  0xa0   : > { %555 = vst.msk [vmem:[#allocation3 + $0x10] sm:$0xff] %vm552_vm3, %v461_v29  ;;  %v465_v34 = vpop.permute.xlu0 %464 }
  0xa1   : > { %703 = vrot.lane.b32.xlu1 %v612_v28, %s3152_s7  ;;  %557 = vst.msk [vmem:[#allocation3 + $0x20] sm:$0xff] %vm552_vm3, %v465_v34 }
  0xa2   : > { %709 = vrot.lane.b32.xlu0 %v615_v33, %s3152_s7 }
  0xa3   : > { %v463_v36 = vpop.permute.xlu1 %462 }
  0xa4   : > { %556 = vst.msk [vmem:[#allocation3 + $0x18] sm:$0xff] %vm552_vm3, %v463_v36  ;;  %v469_v37 = vpop.permute.xlu0 %468 }
  0xa5   : > { %707 = vrot.lane.b32.xlu1 %v614_v35, %s3152_s7  ;;  %559 = vst.msk [vmem:[#allocation3 + $0x30] sm:$0xff] %vm552_vm3, %v469_v37 }
  0xa6   : > { %842 = vrot.lane.b32.xlu0 %v3400_v48, %s3153_s8 }
  0xa7   : > { %v467_v22 = vpop.permute.xlu1 %466 }
  0xa8   : > { %558 = vst.msk [vmem:[#allocation3 + $0x28] sm:$0xff] %vm552_vm3, %v467_v22  ;;  %v473_v24 = vpop.permute.xlu0 %472 }
  0xa9   : > { %711 = vrot.lane.b32.xlu1 %v616_v45, %s3152_s7  ;;  %561 = vst.msk [vmem:[#allocation3 + $0x40] sm:$0xff] %vm552_vm3, %v473_v24 }
  0xaa   : > { %846 = vrot.lane.b32.xlu0 %v3406_v49, %s3153_s8 }
  0xab   : > { %v471_v28 = vpop.permute.xlu1 %470 }
  0xac   : > { %560 = vst.msk [vmem:[#allocation3 + $0x38] sm:$0xff] %vm552_vm3, %v471_v28  ;;  %v477_v29 = vpop.permute.xlu0 %476 }
  0xad   : > { %844 = vrot.lane.b32.xlu1 %v3410_v51, %s3153_s8  ;;  %563 = vst.msk [vmem:[#allocation3 + $0x50] sm:$0xff] %vm552_vm3, %v477_v29 }
  0xae   : > { %850 = vrot.lane.b32.xlu0 %v3412_v52, %s3153_s8 }
  0xaf   : > { %v475_v48 = vpop.permute.xlu1 %474 }
  0xb0   : > { %562 = vst.msk [vmem:[#allocation3 + $0x48] sm:$0xff] %vm552_vm3, %v475_v48  ;;  %v481_v33 = vpop.permute.xlu0 %480  ;;  %v1971_v48 = vld [vmem:[%s4428_s1 + $0x10] sm:$0xff] }
  0xb1   : > { %848 = vrot.lane.b32.xlu1 %v3422_v54, %s3153_s8  ;;  %565 = vst.msk [vmem:[#allocation3 + $0x60] sm:$0xff] %vm552_vm3, %v481_v33  ;;  %v1972_v33 = vld [vmem:[%s4428_s1 + $0x18] sm:$0xff] }
  0xb2   : > { %854 = vrot.lane.b32.xlu0 %v3424_v55, %s3153_s8 }
  0xb3   : > { %v479_v34 = vpop.permute.xlu1 %478 }
  0xb4   : > { %564 = vst.msk [vmem:[#allocation3 + $0x58] sm:$0xff] %vm552_vm3, %v479_v34  ;;  %v485_v51 = vpop.permute.xlu0 %484  ;;  %v2991_v34 = vpack.c.bf16 %v1972_v33, %v1971_v48 }
  0xb5   : > { %852 = vrot.lane.b32.xlu1 %v3430_v57, %s3153_s8  ;;  %567 = vst.msk [vmem:[#allocation3 + $0x70] sm:$0xff] %vm552_vm3, %v485_v51 }
  0xb6   : > { %858 = vrot.lane.b32.xlu0 %v3432_v58, %s3153_s8 }
  0xb7   : > { %v483_v35 = vpop.permute.xlu1 %482 }
  0xb8   : > { %566 = vst.msk [vmem:[#allocation3 + $0x68] sm:$0xff] %vm552_vm3, %v483_v35  ;;  %v489_v36 = vpop.permute.xlu0 %488 }
  0xb9   : > { %856 = vrot.lane.b32.xlu1 %v3434_v59, %s3153_s8  ;;  %569 = vst.msk [vmem:[#allocation3 + $0x80] sm:$0xff] %vm552_vm3, %v489_v36  ;;  %v1973_v36 = vld [vmem:[%s4428_s1 + $0x20] sm:$0xf] }
  0xba   : > { %1035 = vrot.lane.b32.xlu0 %v3331_v25, %s3154_s9 }
  0xbb   : > { %v487_v37 = vpop.permute.xlu1 %486 }
  0xbc   : > { %568 = vst.msk [vmem:[#allocation3 + $0x78] sm:$0xff] %vm552_vm3, %v487_v37  ;;  %v493_v45 = vpop.permute.xlu0 %492 }
  0xbd   : > { %860 = vrot.lane.b32.xlu1 %v3445_v61, %s3153_s8  ;;  %571 = vst.msk [vmem:[#allocation3 + $0x90] sm:$0xff] %vm552_vm3, %v493_v45 }
  0xbe   : > { %1228 = vrot.lane.b32.xlu0 %v3526_v39, %s3155_s10  ;;  %v1969_v39 = vld [vmem:[%s4428_s1] sm:$0xff] }
  0xbf   : > { %v491_v22 = vpop.permute.xlu1 %490 }
  0xc0   : > { %570 = vst.msk [vmem:[#allocation3 + $0x88] sm:$0xff] %vm552_vm3, %v491_v22  ;;  %v497_v24 = vpop.permute.xlu0 %496 }
  0xc1   : > { %1037 = vrot.lane.b32.xlu1 %v3340_v27, %s3154_s9  ;;  %573 = vst.msk [vmem:[#allocation3 + $0xa0] sm:$0xff] %vm552_vm3, %v497_v24  ;;  %v1970_v27 = vld [vmem:[%s4428_s1 + $0x8] sm:$0xff] }
  0xc2   : > { %1422 = vrot.lane.b32.xlu0 %v3406_v49, %s3156_s11  ;;  %v2987_v29 = vpack.c.bf16 %v1970_v27, %v1969_v39 }
  0xc3   : > { %v495_v25 = vpop.permute.xlu1 %494 }
  0xc4   : > { %572 = vst.msk [vmem:[#allocation3 + $0x98] sm:$0xff] %vm552_vm3, %v495_v25  ;;  %v501_v28 = vpop.permute.xlu0 %500  ;;  %2988 = vmatprep.subr.bf16.mxu0 %v2987_v29  ;;  %2995 = vmatprep.subr.bf16.mxu1 %v2987_v29 }
  0xc5   : > { %1230 = vrot.lane.b32.xlu1 %v3534_v50, %s3155_s10  ;;  %575 = vst.msk [vmem:[#allocation3 + $0xb0] sm:$0xff] %vm552_vm3, %v501_v28  ;;  %2990 = vmatpush3.bf16.msra.mxu0 %v2987_v29 }
  0xc6   : > { %1615 = vrot.lane.b32.xlu0 %v3333_v26, %s3157_s22  ;;  %2998 = vmatpush3.bf16.msra.mxu1 %v2987_v29 }
  0xc7   : > { %v499_v49 = vpop.permute.xlu1 %498  ;;  %2992 = vmatprep.subr.bf16.mxu0 %v2991_v34  ;;  %2996 = vmatprep.subr.bf16.mxu1 %v2991_v34 }
  0xc8   : > { %574 = vst.msk [vmem:[#allocation3 + $0xa8] sm:$0xff] %vm552_vm3, %v499_v49  ;;  %v505_v50 = vpop.permute.xlu0 %504 }
  0xc9   : > { %1424 = vrot.lane.b32.xlu1 %v3422_v54, %s3156_s11  ;;  %577 = vst.msk [vmem:[#allocation3 + $0xc0] sm:$0xff] %vm552_vm3, %v505_v50  ;;  %2994 = vmatpush3.bf16.msra.mxu0 %v2991_v34 }
  0xca   : > { %1617 = vrot.lane.b32.xlu0 %v3352_v31, %s3157_s22  ;;  %2999 = vmatpush3.bf16.msra.mxu1 %v2991_v34 }
  0xcb   : > { %v503_v51 = vpop.permute.xlu1 %502  ;;  %2937 = vmatprep.subr.msk.mxu0 %vm2071_vm4, %v1973_v36  ;;  %2997 = vmatprep.subr.msk.mxu1 %vm2071_vm4, %v1973_v36 }
  0xcc   : > { %576 = vst.msk [vmem:[#allocation3 + $0xb8] sm:$0xff] %vm552_vm3, %v503_v51  ;;  %v509_v54 = vpop.permute.xlu0 %508 }
  0xcd   : > { %1039 = vrot.lane.b32.xlu1 %v3333_v26, %s3154_s9  ;;  %579 = vst.msk [vmem:[#allocation3 + $0xd0] sm:$0xff] %vm552_vm3, %v509_v54  ;;  %2938 = vmatpush3.msk.msra.mxu0 %vm2071_vm4, %v1973_v36 }
  0xce   : > { %1041 = vrot.lane.b32.xlu0 %v3352_v31, %s3154_s9  ;;  %3000 = vmatpush3.msk.msra.mxu1 %vm2071_vm4, %v1973_v36 }
  0xcf   : > { %v507_v35 = vpop.permute.xlu1 %506 }
  0xd0   : > { %578 = vst.msk [vmem:[#allocation3 + $0xc8] sm:$0xff] %vm552_vm3, %v507_v35  ;;  %v513_v37 = vpop.permute.xlu0 %512 }
  0xd1   : > { %1808 = vrot.lane.b32.xlu1 %v3531_v46, %s3158_s12  ;;  %581 = vst.msk [vmem:[#allocation3 + $0xe0] sm:$0xff] %vm552_vm3, %v513_v37 }
  0xd2   : > { %1810 = vrot.lane.b32.xlu0 %v3542_v63, %s3158_s12 }
  0xd3   : > { %v511_v26 = vpop.permute.xlu1 %510 }
  0xd4   : > { %580 = vst.msk [vmem:[#allocation3 + $0xd8] sm:$0xff] %vm552_vm3, %v511_v26  ;;  %v517_v31 = vpop.permute.xlu0 %516 }
  0xd5   : > { %1232 = vrot.lane.b32.xlu1 %v3531_v46, %s3155_s10  ;;  %583 = vst.msk [vmem:[#allocation3 + $0xf0] sm:$0xff] %vm552_vm3, %v517_v31 }
  0xd6   : > { %1426 = vrot.lane.b32.xlu0 %v3412_v52, %s3156_s11 }
  0xd7   : > { %v515_v45 = vpop.permute.xlu1 %514 }
  0xd8   : > { %582 = vst.msk [vmem:[#allocation3 + $0xe8] sm:$0xff] %vm552_vm3, %v515_v45  ;;  %v650_v22 = vpop.permute.xlu0 %649 }
  0xd9   : > { %1234 = vrot.lane.b32.xlu1 %v3542_v63, %s3155_s10  ;;  %746 = vst.msk [vmem:[#allocation3] sm:$0xff] %vm745_vm5, %v650_v22 }
  0xda   : > { %1619 = vrot.lane.b32.xlu0 %v3348_v30, %s3157_s22 }
  0xdb   : > { %v519_v24 = vpop.permute.xlu1 %518 }
  0xdc   : > { %584 = vst.msk [vmem:[#allocation3 + $0xf8] sm:$0xff] %vm552_vm3, %v519_v24  ;;  %v654_v46 = vpop.permute.xlu0 %653  ;;  %v983_v24 = vld [vmem:[#allocation2 + $0xa9] sm:$0xff] }
  0xdd   : > { %1428 = vrot.lane.b32.xlu1 %v3430_v57, %s3156_s11  ;;  %748 = vst.msk [vmem:[#allocation3 + $0x10] sm:$0xff] %vm745_vm5, %v654_v46 }
  0xde   : > { %1621 = vrot.lane.b32.xlu0 %v3368_v38, %s3157_s22 }
  0xdf   : > { %v652_v52 = vpop.permute.xlu1 %651 }
  0xe0   : > { %747 = vst.msk [vmem:[#allocation3 + $0x8] sm:$0xff] %vm745_vm5, %v652_v52  ;;  %v658_v63 = vpop.permute.xlu0 %657 }
  0xe1   : > { %1043 = vrot.lane.b32.xlu1 %v3348_v30, %s3154_s9  ;;  %750 = vst.msk [vmem:[#allocation3 + $0x20] sm:$0xff] %vm745_vm5, %v658_v63 }
  0xe2   : > { %1045 = vrot.lane.b32.xlu0 %v3368_v38, %s3154_s9 }
  0xe3   : > { %v656_v25 = vpop.permute.xlu1 %655 }
  0xe4   : > { %749 = vst.msk [vmem:[#allocation3 + $0x18] sm:$0xff] %vm745_vm5, %v656_v25  ;;  %v662_v57 = vpop.permute.xlu0 %661 }
  0xe5   : > { %1812 = vrot.lane.b32.xlu1 %v3538_v56, %s3158_s12  ;;  %752 = vst.msk [vmem:[#allocation3 + $0x30] sm:$0xff] %vm745_vm5, %v662_v57 }
  0xe6   : > { %1814 = vrot.lane.b32.xlu0 %v3550_v12, %s3158_s12 }
  0xe7   : > { %v660_v28 = vpop.permute.xlu1 %659 }
  0xe8   : > { %751 = vst.msk [vmem:[#allocation3 + $0x28] sm:$0xff] %vm745_vm5, %v660_v28  ;;  %v666_v30 = vpop.permute.xlu0 %665  ;;  %v1563_v28 = vld [vmem:[#allocation2 + $0xc1] sm:$0xff] }
  0xe9   : > { %1236 = vrot.lane.b32.xlu1 %v3538_v56, %s3155_s10  ;;  %754 = vst.msk [vmem:[#allocation3 + $0x40] sm:$0xff] %vm745_vm5, %v666_v30 }
  0xea   : > { %1430 = vrot.lane.b32.xlu0 %v3424_v55, %s3156_s11 }
  0xeb   : > { %v664_v38 = vpop.permute.xlu1 %663 }
  0xec   : > { %753 = vst.msk [vmem:[#allocation3 + $0x38] sm:$0xff] %vm745_vm5, %v664_v38  ;;  %v670_v39 = vpop.permute.xlu0 %669  ;;  %v1564_v38 = vld [vmem:[#allocation2 + $0xc9] sm:$0xff] }
  0xed   : > { %1238 = vrot.lane.b32.xlu1 %v3550_v12, %s3155_s10  ;;  %756 = vst.msk [vmem:[#allocation3 + $0x50] sm:$0xff] %vm745_vm5, %v670_v39 }
  0xee   : > { %1623 = vrot.lane.b32.xlu0 %v3356_v32, %s3157_s22 }
  0xef   : > { %v668_v27 = vpop.permute.xlu1 %667 }
  0xf0   : > { %755 = vst.msk [vmem:[#allocation3 + $0x48] sm:$0xff] %vm745_vm5, %v668_v27  ;;  %v674_v56 = vpop.permute.xlu0 %673 }
  0xf1   : > { %1432 = vrot.lane.b32.xlu1 %v3434_v59, %s3156_s11  ;;  %758 = vst.msk [vmem:[#allocation3 + $0x60] sm:$0xff] %vm745_vm5, %v674_v56 }
  0xf2   : > { %1625 = vrot.lane.b32.xlu0 %v3380_v41, %s3157_s22 }
  0xf3   : > { %v672_v55 = vpop.permute.xlu1 %671 }
  0xf4   : > { %757 = vst.msk [vmem:[#allocation3 + $0x58] sm:$0xff] %vm745_vm5, %v672_v55  ;;  %v678_v12 = vpop.permute.xlu0 %677 }
  0xf5   : > { %1047 = vrot.lane.b32.xlu1 %v3356_v32, %s3154_s9  ;;  %760 = vst.msk [vmem:[#allocation3 + $0x70] sm:$0xff] %vm745_vm5, %v678_v12 }
  0xf6   : > { %1049 = vrot.lane.b32.xlu0 %v3380_v41, %s3154_s9 }
  0xf7   : > { %v676_v29 = vpop.permute.xlu1 %675 }
  0xf8   : > { %759 = vst.msk [vmem:[#allocation3 + $0x68] sm:$0xff] %vm745_vm5, %v676_v29  ;;  %v682_v59 = vpop.permute.xlu0 %681 }
  0xf9   : > { %1816 = vrot.lane.b32.xlu1 %v3546_v11, %s3158_s12  ;;  %762 = vst.msk [vmem:[#allocation3 + $0x80] sm:$0xff] %vm745_vm5, %v682_v59 }
  0xfa   : > { %1818 = vrot.lane.b32.xlu0 %v3558_v15, %s3158_s12 }
  0xfb   : > { %v680_v49 = vpop.permute.xlu1 %679 }
  0xfc   : > { %761 = vst.msk [vmem:[#allocation3 + $0x78] sm:$0xff] %vm745_vm5, %v680_v49  ;;  %v686_v32 = vpop.permute.xlu0 %685 }
  0xfd   : > { %1240 = vrot.lane.b32.xlu1 %v3546_v11, %s3155_s10  ;;  %764 = vst.msk [vmem:[#allocation3 + $0x90] sm:$0xff] %vm745_vm5, %v686_v32 }
  0xfe   : > { %1434 = vrot.lane.b32.xlu0 %v3432_v58, %s3156_s11 }
  0xff   : > { %v684_v41 = vpop.permute.xlu1 %683 }
 0x100   : > { %763 = vst.msk [vmem:[#allocation3 + $0x88] sm:$0xff] %vm745_vm5, %v684_v41  ;;  %v690_v50 = vpop.permute.xlu0 %689 }
 0x101   : > { %1242 = vrot.lane.b32.xlu1 %v3558_v15, %s3155_s10  ;;  %766 = vst.msk [vmem:[#allocation3 + $0xa0] sm:$0xff] %vm745_vm5, %v690_v50 }
 0x102   : > { %1627 = vrot.lane.b32.xlu0 %v3376_v40, %s3157_s22 }
 0x103   : > { %v688_v48 = vpop.permute.xlu1 %687 }
 0x104   : > { %765 = vst.msk [vmem:[#allocation3 + $0x98] sm:$0xff] %vm745_vm5, %v688_v48  ;;  %v694_v11 = vpop.permute.xlu0 %693 }
 0x105   : > { %1436 = vrot.lane.b32.xlu1 %v3445_v61, %s3156_s11  ;;  %768 = vst.msk [vmem:[#allocation3 + $0xb0] sm:$0xff] %vm745_vm5, %v694_v11  ;;  %v1566_v11 = vld [vmem:[#allocation2 + $0xe1] sm:$0xff] }
 0x106   : > { %1629 = vrot.lane.b32.xlu0 %v3388_v43, %s3157_s22 }
 0x107   : > { %v692_v58 = vpop.permute.xlu1 %691 }
 0x108   : > { %767 = vst.msk [vmem:[#allocation3 + $0xa8] sm:$0xff] %vm745_vm5, %v692_v58  ;;  %v698_v15 = vpop.permute.xlu0 %697 }
 0x109   : > { %1051 = vrot.lane.b32.xlu1 %v3376_v40, %s3154_s9  ;;  %770 = vst.msk [vmem:[#allocation3 + $0xc0] sm:$0xff] %vm745_vm5, %v698_v15 }
 0x10a   : > { %1053 = vrot.lane.b32.xlu0 %v3388_v43, %s3154_s9 }
 0x10b   : > { %v696_v33 = vpop.permute.xlu1 %695 }
 0x10c   : > { %769 = vst.msk [vmem:[#allocation3 + $0xb8] sm:$0xff] %vm745_vm5, %v696_v33  ;;  %v702_v61 = vpop.permute.xlu0 %701 }
 0x10d   : > { %1820 = vrot.lane.b32.xlu1 %v3554_v13, %s3158_s12  ;;  %772 = vst.msk [vmem:[#allocation3 + $0xd0] sm:$0xff] %vm745_vm5, %v702_v61  ;;  %v1759_v61 = vld [vmem:[#allocation2 + $0xe2] sm:$0xff] }
 0x10e   : > { %1822 = vrot.lane.b32.xlu0 %v3566_v17, %s3158_s12 }
 0x10f   : > { %v700_v34 = vpop.permute.xlu1 %699 }
 0x110   : > { %771 = vst.msk [vmem:[#allocation3 + $0xc8] sm:$0xff] %vm745_vm5, %v700_v34  ;;  %v706_v40 = vpop.permute.xlu0 %705 }
 0x111   : > { %1244 = vrot.lane.b32.xlu1 %v3554_v13, %s3155_s10  ;;  %774 = vst.msk [vmem:[#allocation3 + $0xe0] sm:$0xff] %vm745_vm5, %v706_v40 }
 0x112   : > { %1438 = vrot.lane.b32.xlu0 %v3443_v60, %s3156_s11 }
 0x113   : > { %v704_v43 = vpop.permute.xlu1 %703 }
 0x114   : > { %773 = vst.msk [vmem:[#allocation3 + $0xd8] sm:$0xff] %vm745_vm5, %v704_v43  ;;  %v710_v51 = vpop.permute.xlu0 %709 }
 0x115   : > { %1246 = vrot.lane.b32.xlu1 %v3566_v17, %s3155_s10  ;;  %776 = vst.msk [vmem:[#allocation3 + $0xf0] sm:$0xff] %vm745_vm5, %v710_v51 }
 0x116   : > { %1440 = vrot.lane.b32.xlu0 %v3455_v0, %s3156_s11 }
 0x117   : > { %v708_v54 = vpop.permute.xlu1 %707 }
 0x118   : > { %775 = vst.msk [vmem:[#allocation3 + $0xe8] sm:$0xff] %vm745_vm5, %v708_v54  ;;  %v843_v13 = vpop.permute.xlu0 %842 }
 0x119   : > { %862 = vrot.lane.b32.xlu1 %v3443_v60, %s3153_s8  ;;  %939 = vst.msk [vmem:[#allocation3] sm:$0xff] %vm938_vm6, %v843_v13 }
 0x11a   : > { %864 = vrot.lane.b32.xlu0 %v3455_v0, %s3153_s8 }
 0x11b   : > { %v712_v35 = vpop.permute.xlu1 %711 }
 0x11c   : > { %777 = vst.msk [vmem:[#allocation3 + $0xf8] sm:$0xff] %vm745_vm5, %v712_v35  ;;  %v847_v17 = vpop.permute.xlu0 %846 }
 0x11d   : > { %1631 = vrot.lane.b32.xlu1 %v3384_v42, %s3157_s22  ;;  %941 = vst.msk [vmem:[#allocation3 + $0x10] sm:$0xff] %vm938_vm6, %v847_v17 }
 0x11e   : > { %1633 = vrot.lane.b32.xlu0 %v3397_v47, %s3157_s22 }
 0x11f   : > { %v845_v36 = vpop.permute.xlu1 %844 }
 0x120   : > { %940 = vst.msk [vmem:[#allocation3 + $0x8] sm:$0xff] %vm938_vm6, %v845_v36  ;;  %v851_v60 = vpop.permute.xlu0 %850 }
 0x121   : > { %1055 = vrot.lane.b32.xlu1 %v3384_v42, %s3154_s9  ;;  %943 = vst.msk [vmem:[#allocation3 + $0x20] sm:$0xff] %vm938_vm6, %v851_v60  ;;  %v1567_v60 = vld [vmem:[#allocation2 + $0xf1] sm:$0xff] }
 0x122   : > { %1057 = vrot.lane.b32.xlu0 %v3397_v47, %s3154_s9 }
 0x123   : > { %v849_v0 = vpop.permute.xlu1 %848 }
 0x124   : > { %942 = vst.msk [vmem:[#allocation3 + $0x18] sm:$0xff] %vm938_vm6, %v849_v0  ;;  %v855_v37 = vpop.permute.xlu0 %854  ;;  %v293_v0 = vld [vmem:[%s3286_s5 + $0xf0] sm:$0xff] }
 0x125   : > { %1824 = vrot.lane.b32.xlu1 %v3562_v16, %s3158_s12  ;;  %945 = vst.msk [vmem:[#allocation3 + $0x30] sm:$0xff] %vm938_vm6, %v855_v37 }
 0x126   : > { %1826 = vrot.lane.b32.xlu0 %v3574_v19, %s3158_s12  ;;  %326 = vst.msk [vmem:[#allocation2 + $0x181] sm:$0xff] %vm217_vm0, %v293_v0 }
 0x127   : > { %v853_v26 = vpop.permute.xlu1 %852 }
 0x128   : > { %944 = vst.msk [vmem:[#allocation3 + $0x28] sm:$0xff] %vm938_vm6, %v853_v26  ;;  %v859_v42 = vpop.permute.xlu0 %858  ;;  %v1568_v26 = vld [vmem:[#allocation2 + $0xf9] sm:$0xff] }
 0x129   : > { %1248 = vrot.lane.b32.xlu1 %v3562_v16, %s3155_s10  ;;  %947 = vst.msk [vmem:[#allocation3 + $0x40] sm:$0xff] %vm938_vm6, %v859_v42 }
 0x12a   : > { %1442 = vrot.lane.b32.xlu0 %v3447_v62, %s3156_s11 }
 0x12b   : > { %v857_v47 = vpop.permute.xlu1 %856 }
 0x12c   : > { %946 = vst.msk [vmem:[#allocation3 + $0x38] sm:$0xff] %vm938_vm6, %v857_v47  ;;  %v1036_v31 = vpop.permute.xlu0 %1035  ;;  %v294_v47 = vld [vmem:[%s3286_s5 + $0xf8] sm:$0xff]  ;;  %s2859_s5 = sshll.u32 %s3279_s27, 7  ;;  %s4341_s27 = sand.u32 1, %s3140_s16  }
 0x12d   : > { %1250 = vrot.lane.b32.xlu1 %v3574_v19, %s3155_s10  ;;  %1132 = vst.msk [vmem:[#allocation3] sm:$0xff] %vm1131_vm7, %v1036_v31  ;;  %v1760_v31 = vld [vmem:[#allocation2 + $0xf2] sm:$0xff]  ;;  %s4134_s13 = scalar_lea.vmem %s4429_s2, %s2859_s5  ;;  %s206_s20 = scalar_lea.vmem [#allocation6], %s4341_s27 }
 0x12e   : > { %1444 = vrot.lane.b32.xlu0 %v3459_v2, %s3156_s11  ;;  %327 = vst.msk [vmem:[#allocation2 + $0x189] sm:$0xff] %vm217_vm0, %v294_v47  ;;  %s2641_s7 = scalar_lea.sflag [#allocation5], %s4341_s27  ;;  %s3159_s5 = smov [#allocation4]  }
 0x12f   : > { %v861_v45 = vpop.permute.xlu1 %860 }
 0x130   : > { %948 = vst.msk [vmem:[#allocation3 + $0x48] sm:$0xff] %vm938_vm6, %v861_v45  ;;  %v1229_v16 = vpop.permute.xlu0 %1228 }
 0x131   : > { %866 = vrot.lane.b32.xlu1 %v3447_v62, %s3153_s8  ;;  %1325 = vst.msk [vmem:[#allocation3] sm:$0xff] %vm1324_vm8, %v1229_v16  ;;  %v1761_v16 = vld [vmem:[#allocation2 + $0xfa] sm:$0xff] }
 0x132   : > { %868 = vrot.lane.b32.xlu0 %v3459_v2, %s3153_s8 }
 0x133   : > { %v1038_v22 = vpop.permute.xlu1 %1037 }
 0x134   : > { %1133 = vst.msk [vmem:[#allocation3 + $0x8] sm:$0xff] %vm1131_vm7, %v1038_v22  ;;  %v1423_v19 = vpop.permute.xlu0 %1422 }
 0x135   : > { %1635 = vrot.lane.b32.xlu1 %v3392_v44, %s3157_s22  ;;  %1519 = vst.msk [vmem:[#allocation3] sm:$0xff] %vm1518_vm9, %v1423_v19 }
 0x136   : > { %1637 = vrot.lane.b32.xlu0 %v3416_v53, %s3157_s22 }
 0x137   : > { %v1231_v62 = vpop.permute.xlu1 %1230 }
 0x138   : > { %1326 = vst.msk [vmem:[#allocation3 + $0x8] sm:$0xff] %vm1324_vm8, %v1231_v62  ;;  %v1616_v46 = vpop.permute.xlu0 %1615 }
 0x139   : > { %1059 = vrot.lane.b32.xlu1 %v983_v24, %s3154_s9  ;;  %1712 = vst.msk [vmem:[#allocation3] sm:$0xff] %vm1711_vm10, %v1616_v46 }
 0x13a   : > { %1061 = vrot.lane.b32.xlu0 %v3416_v53, %s3154_s9 }
 0x13b   : > { %v1425_v2 = vpop.permute.xlu1 %1424 }
 0x13c   : > { %1520 = vst.msk [vmem:[#allocation3 + $0x8] sm:$0xff] %vm1518_vm9, %v1425_v2  ;;  %v1618_v44 = vpop.permute.xlu0 %1617 }
 0x13d   : > { %1828 = vrot.lane.b32.xlu1 %v3570_v18, %s3158_s12  ;;  %1713 = vst.msk [vmem:[#allocation3 + $0x8] sm:$0xff] %vm1711_vm10, %v1618_v44 }
 0x13e   : > { %1830 = vrot.lane.b32.xlu0 %v3582_v21, %s3158_s12 }
 0x13f   : > { %v1040_v52 = vpop.permute.xlu1 %1039 }
 0x140   : > { %1134 = vst.msk [vmem:[#allocation3 + $0x10] sm:$0xff] %vm1131_vm7, %v1040_v52  ;;  %v1042_v63 = vpop.permute.xlu0 %1041 }
 0x141   : > { %1252 = vrot.lane.b32.xlu1 %v3570_v18, %s3155_s10  ;;  %1135 = vst.msk [vmem:[#allocation3 + $0x18] sm:$0xff] %vm1131_vm7, %v1042_v63 }
 0x142   : > { %1446 = vrot.lane.b32.xlu0 %v3457_v1, %s3156_s11 }
 0x143   : > { %v1809_v53 = vpop.permute.xlu1 %1808 }
 0x144   : > { %1905 = vst.msk [vmem:[#allocation3] sm:$0xff] %vm1904_vm11, %v1809_v53  ;;  %v1811_v25 = vpop.permute.xlu0 %1810  ;;  %v1569_v53 = vld [vmem:[#allocation2 + $0x109] sm:$0xff] }
 0x145   : > { %1254 = vrot.lane.b32.xlu1 %v3582_v21, %s3155_s10  ;;  %1906 = vst.msk [vmem:[#allocation3 + $0x8] sm:$0xff] %vm1904_vm11, %v1811_v25 }
 0x146   : > { %1448 = vrot.lane.b32.xlu0 %v3471_v4, %s3156_s11 }
 0x147   : > { %v1233_v57 = vpop.permute.xlu1 %1232 }
 0x148   : > { %1327 = vst.msk [vmem:[#allocation3 + $0x10] sm:$0xff] %vm1324_vm8, %v1233_v57  ;;  %v1427_v18 = vpop.permute.xlu0 %1426  ;;  %v1570_v57 = vld [vmem:[#allocation2 + $0x111] sm:$0xff] }
 0x149   : > { %870 = vrot.lane.b32.xlu1 %v3457_v1, %s3153_s8  ;;  %1521 = vst.msk [vmem:[#allocation3 + $0x10] sm:$0xff] %vm1518_vm9, %v1427_v18 }
 0x14a   : > { %872 = vrot.lane.b32.xlu0 %v3471_v4, %s3153_s8 }
 0x14b   : > { %v1235_v21 = vpop.permute.xlu1 %1234  ;;  %v1937_v30 = vld [vmem:[#allocation3] sm:$0xff] }
 0x14c   : > { %1328 = vst.msk [vmem:[#allocation3 + $0x18] sm:$0xff] %vm1324_vm8, %v1235_v21  ;;  %2939 = vmatprep.mubr.msk.f32.mxu0 %vm1974_vm12, %v1937_v30  ;;  %v1620_v39 = vpop.permute.xlu0 %1619  ;;  %v1938_v27 = vld [vmem:[#allocation3 + $0x8] sm:$0xff] }
 0x14d   : > { %1639 = vrot.lane.b32.xlu1 %v1563_v28, %s3157_s22  ;;  %1714 = vst.msk [vmem:[#allocation3 + $0x10] sm:$0xff] %vm1711_vm10, %v1620_v39  ;;  %2940 = vmatmul.mubr.msk.f32.vlgmr.msra.gmra.mrb[0].mxu0 %vm1974_vm12, %v1938_v27  ;;  %v1763_v30 = vld [vmem:[#allocation2 + $0x112] sm:$0xff] }
 0x14e   : > { %1641 = vrot.lane.b32.xlu0 %v1564_v38, %s3157_s22 }
 0x14f   : > { %v1429_v1 = vpop.permute.xlu1 %1428 }
 0x150   : > { %1522 = vst.msk [vmem:[#allocation3 + $0x18] sm:$0xff] %vm1518_vm9, %v1429_v1  ;;  %v1622_v4 = vpop.permute.xlu0 %1621 }
 0x151   : > { %1063 = vrot.lane.b32.xlu1 %v1563_v28, %s3154_s9  ;;  %1715 = vst.msk [vmem:[#allocation3 + $0x18] sm:$0xff] %vm1711_vm10, %v1622_v4 }
 0x152   : > { %1065 = vrot.lane.b32.xlu0 %v1564_v38, %s3154_s9 }
 0x153   : > { %v1044_v56 = vpop.permute.xlu1 %1043 }
 0x154   : > { %1136 = vst.msk [vmem:[#allocation3 + $0x20] sm:$0xff] %vm1131_vm7, %v1044_v56  ;;  %v1046_v55 = vpop.permute.xlu0 %1045 }
 0x155   : > { %1832 = vrot.lane.b32.xlu1 %v3578_v20, %s3158_s12  ;;  %1137 = vst.msk [vmem:[#allocation3 + $0x28] sm:$0xff] %vm1131_vm7, %v1046_v55 }
 0x156   : > { %1834 = vrot.lane.b32.xlu0 %v3588_v23, %s3158_s12 }
 0x157   : > { %v1813_v12 = vpop.permute.xlu1 %1812 }
 0x158   : > { %1907 = vst.msk [vmem:[#allocation3 + $0x10] sm:$0xff] %vm1904_vm11, %v1813_v12  ;;  %v1815_v29 = vpop.permute.xlu0 %1814 }
 0x159   : > { %1256 = vrot.lane.b32.xlu1 %v3578_v20, %s3155_s10  ;;  %1908 = vst.msk [vmem:[#allocation3 + $0x18] sm:$0xff] %vm1904_vm11, %v1815_v29 }
 0x15a   : > { %1450 = vrot.lane.b32.xlu0 %v3469_v3, %s3156_s11 }
 0x15b   : > { %v1237_v59 = vpop.permute.xlu1 %1236 }
 0x15c   : > { %1329 = vst.msk [vmem:[#allocation3 + $0x20] sm:$0xff] %vm1324_vm8, %v1237_v59  ;;  %v1431_v49 = vpop.permute.xlu0 %1430  ;;  %v1571_v59 = vld [vmem:[#allocation2 + $0x121] sm:$0xff] }
 0x15d   : > { %1258 = vrot.lane.b32.xlu1 %v3588_v23, %s3155_s10  ;;  %1523 = vst.msk [vmem:[#allocation3 + $0x20] sm:$0xff] %vm1518_vm9, %v1431_v49  ;;  %v1565_v23 = vld [vmem:[#allocation2 + $0xd9] sm:$0xff] }
 0x15e   : > { %1452 = vrot.lane.b32.xlu0 %v3481_v6, %s3156_s11 }
 0x15f   : > { %v1239_v32 = vpop.permute.xlu1 %1238  ;;  %v1939_v41 = vld [vmem:[#allocation3 + $0x10] sm:$0xff] }
 0x160   : > { %1330 = vst.msk [vmem:[#allocation3 + $0x28] sm:$0xff] %vm1324_vm8, %v1239_v32  ;;  %2942 = vmatprep.mubr.msk.f32.mxu0 %vm1974_vm12, %v1939_v41  ;;  %v1624_v20 = vpop.permute.xlu0 %1623  ;;  %v1940_v50 = vld [vmem:[#allocation3 + $0x18] sm:$0xff] }
 0x161   : > { %874 = vrot.lane.b32.xlu1 %v3469_v3, %s3153_s8  ;;  %1716 = vst.msk [vmem:[#allocation3 + $0x20] sm:$0xff] %vm1711_vm10, %v1624_v20  ;;  %2943 = vmatmul.mubr.msk.f32.gmra.mrb[2].mxu0 %vm1974_vm12, %v1940_v50  ;;  %v1572_v32 = vld [vmem:[#allocation2 + $0x129] sm:$0xff] }
 0x162   : > { %876 = vrot.lane.b32.xlu0 %v3481_v6, %s3153_s8  ;;  %v1758_v6 = vld [vmem:[#allocation2 + $0xda] sm:$0xff] }
 0x163   : > { %v1433_v48 = vpop.permute.xlu1 %1432 }
 0x164   : > { %1524 = vst.msk [vmem:[#allocation3 + $0x28] sm:$0xff] %vm1518_vm9, %v1433_v48  ;;  %v1626_v58 = vpop.permute.xlu0 %1625 }
 0x165   : > { %1643 = vrot.lane.b32.xlu1 %v1565_v23, %s3157_s22  ;;  %1717 = vst.msk [vmem:[#allocation3 + $0x28] sm:$0xff] %vm1711_vm10, %v1626_v58 }
 0x166   : > { %1645 = vrot.lane.b32.xlu0 %v1566_v11, %s3157_s22 }
 0x167   : > { %v1048_v3 = vpop.permute.xlu1 %1047 }
 0x168   : > { %1138 = vst.msk [vmem:[#allocation3 + $0x30] sm:$0xff] %vm1131_vm7, %v1048_v3  ;;  %v1050_v15 = vpop.permute.xlu0 %1049  ;;  %v1380_v3 = vld [vmem:[#allocation2 + $0x138] sm:$0xff] }
 0x169   : > { %1067 = vrot.lane.b32.xlu1 %v1565_v23, %s3154_s9  ;;  %1139 = vst.msk [vmem:[#allocation3 + $0x38] sm:$0xff] %vm1131_vm7, %v1050_v15  ;;  %v1765_v23 = vld [vmem:[#allocation2 + $0x12a] sm:$0xff] }
 0x16a   : > { %1069 = vrot.lane.b32.xlu0 %v1566_v11, %s3154_s9 }
 0x16b   : > { %v1817_v33 = vpop.permute.xlu1 %1816 }
 0x16c   : > { %1909 = vst.msk [vmem:[#allocation3 + $0x20] sm:$0xff] %vm1904_vm11, %v1817_v33  ;;  %v1819_v34 = vpop.permute.xlu0 %1818 }
 0x16d   : > { %1836 = vrot.lane.b32.xlu1 %v1758_v6, %s3158_s12  ;;  %1910 = vst.msk [vmem:[#allocation3 + $0x28] sm:$0xff] %vm1904_vm11, %v1819_v34 }
 0x16e   : > { %1838 = vrot.lane.b32.xlu0 %v1759_v61, %s3158_s12 }
 0x16f   : > { %v1241_v40 = vpop.permute.xlu1 %1240 }
 0x170   : > { %1331 = vst.msk [vmem:[#allocation3 + $0x30] sm:$0xff] %vm1324_vm8, %v1241_v40  ;;  %v1435_v43 = vpop.permute.xlu0 %1434 }
 0x171   : > { %1260 = vrot.lane.b32.xlu1 %v1758_v6, %s3155_s10  ;;  %1525 = vst.msk [vmem:[#allocation3 + $0x30] sm:$0xff] %vm1518_vm9, %v1435_v43 }
 0x172   : > { %1454 = vrot.lane.b32.xlu0 %v3473_v5, %s3156_s11 }
 0x173   : > { %v1243_v51 = vpop.permute.xlu1 %1242  ;;  %v1941_v54 = vld [vmem:[#allocation3 + $0x20] sm:$0xff] }
 0x174   : > { %1332 = vst.msk [vmem:[#allocation3 + $0x38] sm:$0xff] %vm1324_vm8, %v1243_v51  ;;  %2945 = vmatprep.mubr.msk.f32.mxu0 %vm1974_vm12, %v1941_v54  ;;  %v1628_v13 = vpop.permute.xlu0 %1627  ;;  %v1942_v35 = vld [vmem:[#allocation3 + $0x28] sm:$0xff] }
 0x175   : > { %1262 = vrot.lane.b32.xlu1 %v1759_v61, %s3155_s10  ;;  %1718 = vst.msk [vmem:[#allocation3 + $0x30] sm:$0xff] %vm1711_vm10, %v1628_v13  ;;  %2946 = vmatmul.mubr.msk.f32.gmra.mrb[4].mxu0 %vm1974_vm12, %v1942_v35  ;;  %v1381_v61 = vld [vmem:[#allocation2 + $0x140] sm:$0xff] }
 0x176   : > { %1456 = vrot.lane.b32.xlu0 %v3485_v8, %s3156_s11  ;;  %v1573_v51 = vld [vmem:[#allocation2 + $0x139] sm:$0xff]  ;;  %v1574_v13 = vld [vmem:[#allocation2 + $0x141] sm:$0xff] }
 0x177   : > { %v1437_v17 = vpop.permute.xlu1 %1436 }
 0x178   : > { %1526 = vst.msk [vmem:[#allocation3 + $0x38] sm:$0xff] %vm1518_vm9, %v1437_v17  ;;  %v1630_v36 = vpop.permute.xlu0 %1629 }
 0x179   : > { %878 = vrot.lane.b32.xlu1 %v3473_v5, %s3153_s8  ;;  %1719 = vst.msk [vmem:[#allocation3 + $0x38] sm:$0xff] %vm1711_vm10, %v1630_v36 }
 0x17a   : > { %880 = vrot.lane.b32.xlu0 %v3485_v8, %s3153_s8 }
 0x17b   : > { %v1052_v37 = vpop.permute.xlu1 %1051 }
 0x17c   : > { %1140 = vst.msk [vmem:[#allocation3 + $0x40] sm:$0xff] %vm1131_vm7, %v1052_v37  ;;  %v1054_v42 = vpop.permute.xlu0 %1053  ;;  %v1767_v37 = vld [vmem:[#allocation2 + $0x142] sm:$0xff] }
 0x17d   : > { %1647 = vrot.lane.b32.xlu1 %v1567_v60, %s3157_s22  ;;  %1141 = vst.msk [vmem:[#allocation3 + $0x48] sm:$0xff] %vm1131_vm7, %v1054_v42 }
 0x17e   : > { %1649 = vrot.lane.b32.xlu0 %v1568_v26, %s3157_s22 }
 0x17f   : > { %v1821_v5 = vpop.permute.xlu1 %1820 }
 0x180   : > { %1911 = vst.msk [vmem:[#allocation3 + $0x30] sm:$0xff] %vm1904_vm11, %v1821_v5  ;;  %v1823_v8 = vpop.permute.xlu0 %1822  ;;  %v1382_v5 = vld [vmem:[#allocation2 + $0x150] sm:$0xff] }
 0x181   : > { %1071 = vrot.lane.b32.xlu1 %v1567_v60, %s3154_s9  ;;  %1912 = vst.msk [vmem:[#allocation3 + $0x38] sm:$0xff] %vm1904_vm11, %v1823_v8  ;;  %v1766_v60 = vld [vmem:[#allocation2 + $0x13a] sm:$0xff] }
 0x182   : > { %1073 = vrot.lane.b32.xlu0 %v1568_v26, %s3154_s9 }
 0x183   : > { %v1245_v45 = vpop.permute.xlu1 %1244 }
 0x184   : > { %1333 = vst.msk [vmem:[#allocation3 + $0x40] sm:$0xff] %vm1324_vm8, %v1245_v45  ;;  %v1439_v22 = vpop.permute.xlu0 %1438 }
 0x185   : > { %1840 = vrot.lane.b32.xlu1 %v1760_v31, %s3158_s12  ;;  %1527 = vst.msk [vmem:[#allocation3 + $0x40] sm:$0xff] %vm1518_vm9, %v1439_v22 }
 0x186   : > { %1842 = vrot.lane.b32.xlu0 %v1761_v16, %s3158_s12 }
 0x187   : > { %v1247_v19 = vpop.permute.xlu1 %1246  ;;  %v1943_v24 = vld [vmem:[#allocation3 + $0x30] sm:$0xff] }
 0x188   : > { %1334 = vst.msk [vmem:[#allocation3 + $0x48] sm:$0xff] %vm1324_vm8, %v1247_v19  ;;  %2948 = vmatprep.mubr.msk.f32.mxu0 %vm1974_vm12, %v1943_v24  ;;  %v1441_v62 = vpop.permute.xlu0 %1440  ;;  %v1944_v46 = vld [vmem:[#allocation3 + $0x38] sm:$0xff] }
 0x189   : > { %1264 = vrot.lane.b32.xlu1 %v1760_v31, %s3155_s10  ;;  %1528 = vst.msk [vmem:[#allocation3 + $0x48] sm:$0xff] %vm1518_vm9, %v1441_v62  ;;  %2949 = vmatmul.mubr.msk.f32.gmra.mrb[6].mxu0 %vm1974_vm12, %v1944_v46  ;;  %v1575_v62 = vld [vmem:[#allocation2 + $0x151] sm:$0xff] }
 0x18a   : > { %1458 = vrot.lane.b32.xlu0 %v3483_v7, %s3156_s11 }
 0x18b   : > { %v863_v2 = vpop.permute.xlu1 %862 }
 0x18c   : > { %949 = vst.msk [vmem:[#allocation3 + $0x50] sm:$0xff] %vm938_vm6, %v863_v2  ;;  %v865_v44 = vpop.permute.xlu0 %864  ;;  %v1576_v2 = vld [vmem:[#allocation2 + $0x159] sm:$0xff] }
 0x18d   : > { %1266 = vrot.lane.b32.xlu1 %v1761_v16, %s3155_s10  ;;  %950 = vst.msk [vmem:[#allocation3 + $0x58] sm:$0xff] %vm938_vm6, %v865_v44  ;;  %v1383_v16 = vld [vmem:[#allocation2 + $0x158] sm:$0xff] }
 0x18e   : > { %1460 = vrot.lane.b32.xlu0 %v3496_v10, %s3156_s11 }
 0x18f   : > { %v1632_v52 = vpop.permute.xlu1 %1631 }
 0x190   : > { %1720 = vst.msk [vmem:[#allocation3 + $0x40] sm:$0xff] %vm1711_vm10, %v1632_v52  ;;  %v1634_v63 = vpop.permute.xlu0 %1633 }
 0x191   : > { %882 = vrot.lane.b32.xlu1 %v3483_v7, %s3153_s8  ;;  %1721 = vst.msk [vmem:[#allocation3 + $0x48] sm:$0xff] %vm1711_vm10, %v1634_v63 }
 0x192   : > { %884 = vrot.lane.b32.xlu0 %v3496_v10, %s3153_s8  ;;  %v1762_v10 = vld [vmem:[#allocation2 + $0x10a] sm:$0xff] }
 0x193   : > { %v1056_v25 = vpop.permute.xlu1 %1055 }
 0x194   : > { %1142 = vst.msk [vmem:[#allocation3 + $0x50] sm:$0xff] %vm1131_vm7, %v1056_v25  ;;  %v1058_v18 = vpop.permute.xlu0 %1057 }
 0x195   : > { %1651 = vrot.lane.b32.xlu1 %v1569_v53, %s3157_s22  ;;  %1143 = vst.msk [vmem:[#allocation3 + $0x58] sm:$0xff] %vm1131_vm7, %v1058_v18 }
 0x196   : > { %1653 = vrot.lane.b32.xlu0 %v1570_v57, %s3157_s22 }
 0x197   : > { %v1825_v28 = vpop.permute.xlu1 %1824 }
 0x198   : > { %1913 = vst.msk [vmem:[#allocation3 + $0x40] sm:$0xff] %vm1904_vm11, %v1825_v28  ;;  %v1827_v7 = vpop.permute.xlu0 %1826 }
 0x199   : > { %1075 = vrot.lane.b32.xlu1 %v1569_v53, %s3154_s9  ;;  %1914 = vst.msk [vmem:[#allocation3 + $0x48] sm:$0xff] %vm1904_vm11, %v1827_v7  ;;  %v1768_v53 = vld [vmem:[#allocation2 + $0x152] sm:$0xff] }
 0x19a   : > { %1077 = vrot.lane.b32.xlu0 %v1570_v57, %s3154_s9  ;;  %v1769_v57 = vld [vmem:[#allocation2 + $0x15a] sm:$0xff] }
 0x19b   : > { %v1249_v21 = vpop.permute.xlu1 %1248 }
 0x19c   : > { %1335 = vst.msk [vmem:[#allocation3 + $0x50] sm:$0xff] %vm1324_vm8, %v1249_v21  ;;  %v1443_v38 = vpop.permute.xlu0 %1442 }
 0x19d   : > { %1844 = vrot.lane.b32.xlu1 %v1762_v10, %s3158_s12  ;;  %1529 = vst.msk [vmem:[#allocation3 + $0x50] sm:$0xff] %vm1518_vm9, %v1443_v38 }
 0x19e   : > { %1846 = vrot.lane.b32.xlu0 %v1763_v30, %s3158_s12 }
 0x19f   : > { %v1251_v39 = vpop.permute.xlu1 %1250  ;;  %v1945_v27 = vld [vmem:[#allocation3 + $0x40] sm:$0xff] }
 0x1a0   : > { %1336 = vst.msk [vmem:[#allocation3 + $0x58] sm:$0xff] %vm1324_vm8, %v1251_v39  ;;  %2951 = vmatprep.mubr.msk.f32.mxu0 %vm1974_vm12, %v1945_v27  ;;  %v1445_v1 = vpop.permute.xlu0 %1444  ;;  %v1946_v4 = vld [vmem:[#allocation3 + $0x48] sm:$0xff]  ;;  %v1385_v39 = vld [vmem:[#allocation2 + $0x170] sm:$0xff] }
 0x1a1   : > { %1268 = vrot.lane.b32.xlu1 %v1762_v10, %s3155_s10  ;;  %1530 = vst.msk [vmem:[#allocation3 + $0x58] sm:$0xff] %vm1518_vm9, %v1445_v1  ;;  %2952 = vmatmul.mubr.msk.f32.gmra.mrb[8].mxu0 %vm1974_vm12, %v1946_v4  ;;  %v1384_v10 = vld [vmem:[#allocation2 + $0x168] sm:$0xff] }
 0x1a2   : > { %1462 = vrot.lane.b32.xlu0 %v3494_v9, %s3156_s11 }
 0x1a3   : > { %v867_v56 = vpop.permute.xlu1 %866 }
 0x1a4   : > { %951 = vst.msk [vmem:[#allocation3 + $0x60] sm:$0xff] %vm938_vm6, %v867_v56  ;;  %v869_v55 = vpop.permute.xlu0 %868  ;;  %v1577_v56 = vld [vmem:[#allocation2 + $0x169] sm:$0xff] }
 0x1a5   : > { %1270 = vrot.lane.b32.xlu1 %v1763_v30, %s3155_s10  ;;  %952 = vst.msk [vmem:[#allocation3 + $0x68] sm:$0xff] %vm938_vm6, %v869_v55 }
 0x1a6   : > { %1464 = vrot.lane.b32.xlu0 %v3504_v14, %s3156_s11 }
 0x1a7   : > { %v1636_v12 = vpop.permute.xlu1 %1635 }
 0x1a8   : > { %1722 = vst.msk [vmem:[#allocation3 + $0x50] sm:$0xff] %vm1711_vm10, %v1636_v12  ;;  %v1638_v29 = vpop.permute.xlu0 %1637  ;;  %v1578_v12 = vld [vmem:[#allocation2 + $0x171] sm:$0xff] }
 0x1a9   : > { %886 = vrot.lane.b32.xlu1 %v3494_v9, %s3153_s8  ;;  %1723 = vst.msk [vmem:[#allocation3 + $0x58] sm:$0xff] %vm1711_vm10, %v1638_v29 }
 0x1aa   : > { %888 = vrot.lane.b32.xlu0 %v3504_v14, %s3153_s8  ;;  %v1764_v14 = vld [vmem:[#allocation2 + $0x122] sm:$0xff] }
 0x1ab   : > { %v1060_v49 = vpop.permute.xlu1 %1059 }
 0x1ac   : > { %1144 = vst.msk [vmem:[#allocation3 + $0x60] sm:$0xff] %vm1131_vm7, %v1060_v49  ;;  %v1062_v41 = vpop.permute.xlu0 %1061 }
 0x1ad   : > { %1655 = vrot.lane.b32.xlu1 %v1571_v59, %s3157_s22  ;;  %1145 = vst.msk [vmem:[#allocation3 + $0x68] sm:$0xff] %vm1131_vm7, %v1062_v41 }
 0x1ae   : > { %1657 = vrot.lane.b32.xlu0 %v1572_v32, %s3157_s22 }
 0x1af   : > { %v1829_v20 = vpop.permute.xlu1 %1828 }
 0x1b0   : > { %1915 = vst.msk [vmem:[#allocation3 + $0x50] sm:$0xff] %vm1904_vm11, %v1829_v20  ;;  %v1831_v9 = vpop.permute.xlu0 %1830  ;;  %v1771_v20 = vld [vmem:[#allocation2 + $0x172] sm:$0xff] }
 0x1b1   : > { %1079 = vrot.lane.b32.xlu1 %v1571_v59, %s3154_s9  ;;  %1916 = vst.msk [vmem:[#allocation3 + $0x58] sm:$0xff] %vm1904_vm11, %v1831_v9 }
 0x1b2   : > { %1081 = vrot.lane.b32.xlu0 %v1572_v32, %s3154_s9  ;;  %v1770_v32 = vld [vmem:[#allocation2 + $0x16a] sm:$0xff] }
 0x1b3   : > { %v1253_v50 = vpop.permute.xlu1 %1252 }
 0x1b4   : > { %1337 = vst.msk [vmem:[#allocation3 + $0x60] sm:$0xff] %vm1324_vm8, %v1253_v50  ;;  %v1447_v48 = vpop.permute.xlu0 %1446 }
 0x1b5   : > { %1848 = vrot.lane.b32.xlu1 %v1764_v14, %s3158_s12  ;;  %1531 = vst.msk [vmem:[#allocation3 + $0x60] sm:$0xff] %vm1518_vm9, %v1447_v48 }
 0x1b6   : > { %1850 = vrot.lane.b32.xlu0 %v1765_v23, %s3158_s12 }
 0x1b7   : > { %v1255_v11 = vpop.permute.xlu1 %1254  ;;  %v1947_v58 = vld [vmem:[#allocation3 + $0x50] sm:$0xff] }
 0x1b8   : > { %1338 = vst.msk [vmem:[#allocation3 + $0x68] sm:$0xff] %vm1324_vm8, %v1255_v11  ;;  %2954 = vmatprep.mubr.msk.f32.mxu0 %vm1974_vm12, %v1947_v58  ;;  %v1449_v15 = vpop.permute.xlu0 %1448  ;;  %v1948_v6 = vld [vmem:[#allocation3 + $0x58] sm:$0xff] }
 0x1b9   : > { %1272 = vrot.lane.b32.xlu1 %v1764_v14, %s3155_s10  ;;  %1532 = vst.msk [vmem:[#allocation3 + $0x68] sm:$0xff] %vm1518_vm9, %v1449_v15  ;;  %2955 = vmatmul.mubr.msk.f32.gmra.mrb[10].mxu0 %vm1974_vm12, %v1948_v6 }
 0x1ba   : > { %1466 = vrot.lane.b32.xlu0 %v1380_v3, %s3156_s11 }
 0x1bb   : > { %v871_v33 = vpop.permute.xlu1 %870 }
 0x1bc   : > { %953 = vst.msk [vmem:[#allocation3 + $0x70] sm:$0xff] %vm938_vm6, %v871_v33  ;;  %v873_v34 = vpop.permute.xlu0 %872 }
 0x1bd   : > { %1274 = vrot.lane.b32.xlu1 %v1765_v23, %s3155_s10  ;;  %954 = vst.msk [vmem:[#allocation3 + $0x78] sm:$0xff] %vm938_vm6, %v873_v34  ;;  %v1386_v23 = vld [vmem:[#allocation2 + $0x180] sm:$0xff] }
 0x1be   : > { %1468 = vrot.lane.b32.xlu0 %v1381_v61, %s3156_s11 }
 0x1bf   : > { %v1640_v40 = vpop.permute.xlu1 %1639 }
 0x1c0   : > { %1724 = vst.msk [vmem:[#allocation3 + $0x60] sm:$0xff] %vm1711_vm10, %v1640_v40  ;;  %v1642_v43 = vpop.permute.xlu0 %1641  ;;  %v1580_v40 = vld [vmem:[#allocation2 + $0x189] sm:$0xff] }
 0x1c1   : > { %890 = vrot.lane.b32.xlu1 %v1380_v3, %s3153_s8  ;;  %1725 = vst.msk [vmem:[#allocation3 + $0x68] sm:$0xff] %vm1711_vm10, %v1642_v43  ;;  %v1387_v3 = vld [vmem:[#allocation2 + $0x188] sm:$0xff] }
 0x1c2   : > { %892 = vrot.lane.b32.xlu0 %v1381_v61, %s3153_s8  ;;  %v1579_v61 = vld [vmem:[#allocation2 + $0x181] sm:$0xff] }
 0x1c3   : > { %v1064_v54 = vpop.permute.xlu1 %1063 }
 0x1c4   : > { %1146 = vst.msk [vmem:[#allocation3 + $0x70] sm:$0xff] %vm1131_vm7, %v1064_v54  ;;  %v1066_v35 = vpop.permute.xlu0 %1065 }
 0x1c5   : > { %1659 = vrot.lane.b32.xlu1 %v1573_v51, %s3157_s22  ;;  %1147 = vst.msk [vmem:[#allocation3 + $0x78] sm:$0xff] %vm1131_vm7, %v1066_v35 }
 0x1c6   : > { %1661 = vrot.lane.b32.xlu0 %v1574_v13, %s3157_s22 }
 0x1c7   : > { %v1833_v17 = vpop.permute.xlu1 %1832 }
 0x1c8   : > { %1917 = vst.msk [vmem:[#allocation3 + $0x60] sm:$0xff] %vm1904_vm11, %v1833_v17  ;;  %v1835_v36 = vpop.permute.xlu0 %1834  ;;  %v1773_v17 = vld [vmem:[#allocation2 + $0x18a] sm:$0xff] }
 0x1c9   : > { %1083 = vrot.lane.b32.xlu1 %v1573_v51, %s3154_s9  ;;  %1918 = vst.msk [vmem:[#allocation3 + $0x68] sm:$0xff] %vm1904_vm11, %v1835_v36 }
 0x1ca   : > { %1085 = vrot.lane.b32.xlu0 %v1574_v13, %s3154_s9  ;;  %v1772_v13 = vld [vmem:[#allocation2 + $0x182] sm:$0xff] }
 0x1cb   : > { %v1257_v0 = vpop.permute.xlu1 %1256 }
 0x1cc   : > { %1339 = vst.msk [vmem:[#allocation3 + $0x70] sm:$0xff] %vm1324_vm8, %v1257_v0  ;;  %v1451_v26 = vpop.permute.xlu0 %1450 }
 0x1cd   : > { %1852 = vrot.lane.b32.xlu1 %v1766_v60, %s3158_s12  ;;  %1533 = vst.msk [vmem:[#allocation3 + $0x70] sm:$0xff] %vm1518_vm9, %v1451_v26 }
 0x1ce   : > { %1854 = vrot.lane.b32.xlu0 %v1767_v37, %s3158_s12 }
 0x1cf   : > { %v1259_v42 = vpop.permute.xlu1 %1258  ;;  %v1949_v47 = vld [vmem:[#allocation3 + $0x60] sm:$0xff] }
 0x1d0   : > { %1340 = vst.msk [vmem:[#allocation3 + $0x78] sm:$0xff] %vm1324_vm8, %v1259_v42  ;;  %2957 = vmatprep.mubr.msk.f32.mxu0 %vm1974_vm12, %v1949_v47  ;;  %v1453_v8 = vpop.permute.xlu0 %1452  ;;  %v1950_v31 = vld [vmem:[#allocation3 + $0x68] sm:$0xff] }
 0x1d1   : > { %1276 = vrot.lane.b32.xlu1 %v1766_v60, %s3155_s10  ;;  %1534 = vst.msk [vmem:[#allocation3 + $0x78] sm:$0xff] %vm1518_vm9, %v1453_v8  ;;  %2958 = vmatmul.mubr.msk.f32.gmra.mrb[12].mxu0 %vm1974_vm12, %v1950_v31  ;;  %v1389_v31 = vld [vmem:[#allocation2 + $0x1a0] sm:$0xff] }
 0x1d2   : > { %1470 = vrot.lane.b32.xlu0 %v1382_v5, %s3156_s11 }
 0x1d3   : > { %v875_v45 = vpop.permute.xlu1 %874 }
 0x1d4   : > { %955 = vst.msk [vmem:[#allocation3 + $0x80] sm:$0xff] %vm938_vm6, %v875_v45  ;;  %v877_v22 = vpop.permute.xlu0 %876 }
 0x1d5   : > { %1278 = vrot.lane.b32.xlu1 %v1767_v37, %s3155_s10  ;;  %956 = vst.msk [vmem:[#allocation3 + $0x88] sm:$0xff] %vm938_vm6, %v877_v22  ;;  %v1388_v37 = vld [vmem:[#allocation2 + $0x198] sm:$0xff] }
 0x1d6   : > { %1472 = vrot.lane.b32.xlu0 %v1383_v16, %s3156_s11 }
 0x1d7   : > { %v1644_v19 = vpop.permute.xlu1 %1643 }
 0x1d8   : > { %1726 = vst.msk [vmem:[#allocation3 + $0x70] sm:$0xff] %vm1711_vm10, %v1644_v19  ;;  %v1646_v24 = vpop.permute.xlu0 %1645 }
 0x1d9   : > { %894 = vrot.lane.b32.xlu1 %v1382_v5, %s3153_s8  ;;  %1727 = vst.msk [vmem:[#allocation3 + $0x78] sm:$0xff] %vm1711_vm10, %v1646_v24  ;;  %v1581_v5 = vld [vmem:[#allocation2 + $0x199] sm:$0xff] }
 0x1da   : > { %896 = vrot.lane.b32.xlu0 %v1383_v16, %s3153_s8  ;;  %v1774_v16 = vld [vmem:[#allocation2 + $0x19a] sm:$0xff] }
 0x1db   : > { %v1068_v46 = vpop.permute.xlu1 %1067 }
 0x1dc   : > { %1148 = vst.msk [vmem:[#allocation3 + $0x80] sm:$0xff] %vm1131_vm7, %v1068_v46  ;;  %v1070_v44 = vpop.permute.xlu0 %1069 }
 0x1dd   : > { %1663 = vrot.lane.b32.xlu1 %v1575_v62, %s3157_s22  ;;  %1149 = vst.msk [vmem:[#allocation3 + $0x88] sm:$0xff] %vm1131_vm7, %v1070_v44 }
 0x1de   : > { %1665 = vrot.lane.b32.xlu0 %v1576_v2, %s3157_s22 }
 0x1df   : > { %v1837_v52 = vpop.permute.xlu1 %1836 }
 0x1e0   : > { %1919 = vst.msk [vmem:[#allocation3 + $0x70] sm:$0xff] %vm1904_vm11, %v1837_v52  ;;  %v1839_v63 = vpop.permute.xlu0 %1838 }
 0x1e1   : > { %1087 = vrot.lane.b32.xlu1 %v1575_v62, %s3154_s9  ;;  %1920 = vst.msk [vmem:[#allocation3 + $0x78] sm:$0xff] %vm1904_vm11, %v1839_v63 }
 0x1e2   : > { %1089 = vrot.lane.b32.xlu0 %v1576_v2, %s3154_s9  ;;  %v1582_v2 = vld [vmem:[#allocation2 + $0x1a1] sm:$0xff] }
 0x1e3   : > { %v1261_v25 = vpop.permute.xlu1 %1260 }
 0x1e4   : > { %1341 = vst.msk [vmem:[#allocation3 + $0x80] sm:$0xff] %vm1324_vm8, %v1261_v25  ;;  %v1455_v18 = vpop.permute.xlu0 %1454 }
 0x1e5   : > { %1856 = vrot.lane.b32.xlu1 %v1768_v53, %s3158_s12  ;;  %1535 = vst.msk [vmem:[#allocation3 + $0x80] sm:$0xff] %vm1518_vm9, %v1455_v18 }
 0x1e6   : > { %1858 = vrot.lane.b32.xlu0 %v1769_v57, %s3158_s12 }
 0x1e7   : > { %v1263_v28 = vpop.permute.xlu1 %1262  ;;  %v1951_v7 = vld [vmem:[#allocation3 + $0x70] sm:$0xff] }
 0x1e8   : > { %1342 = vst.msk [vmem:[#allocation3 + $0x88] sm:$0xff] %vm1324_vm8, %v1263_v28  ;;  %2960 = vmatprep.mubr.msk.f32.mxu0 %vm1974_vm12, %v1951_v7  ;;  %v1457_v21 = vpop.permute.xlu0 %1456  ;;  %v1952_v30 = vld [vmem:[#allocation3 + $0x78] sm:$0xff] }
 0x1e9   : > { %1280 = vrot.lane.b32.xlu1 %v1768_v53, %s3155_s10  ;;  %1536 = vst.msk [vmem:[#allocation3 + $0x88] sm:$0xff] %vm1518_vm9, %v1457_v21  ;;  %2961 = vmatmul.mubr.msk.f32.gmra.mrb[14].mxu0 %vm1974_vm12, %v1952_v30  ;;  %v1775_v21 = vld [vmem:[#allocation2 + $0x1a2] sm:$0xff] }
 0x1ea   : > { %1474 = vrot.lane.b32.xlu0 %v1384_v10, %s3156_s11 }
 0x1eb   : > { %v879_v38 = vpop.permute.xlu1 %878 }
 0x1ec   : > { %957 = vst.msk [vmem:[#allocation3 + $0x90] sm:$0xff] %vm938_vm6, %v879_v38  ;;  %v881_v27 = vpop.permute.xlu0 %880 }
 0x1ed   : > { %1282 = vrot.lane.b32.xlu1 %v1769_v57, %s3155_s10  ;;  %958 = vst.msk [vmem:[#allocation3 + $0x98] sm:$0xff] %vm938_vm6, %v881_v27 }
 0x1ee   : > { %1476 = vrot.lane.b32.xlu0 %v1385_v39, %s3156_s11 }
 0x1ef   : > { %v1648_v1 = vpop.permute.xlu1 %1647 }
 0x1f0   : > { %1728 = vst.msk [vmem:[#allocation3 + $0x80] sm:$0xff] %vm1711_vm10, %v1648_v1  ;;  %v1650_v4 = vpop.permute.xlu0 %1649 }
 0x1f1   : > { %898 = vrot.lane.b32.xlu1 %v1384_v10, %s3153_s8  ;;  %1729 = vst.msk [vmem:[#allocation3 + $0x88] sm:$0xff] %vm1711_vm10, %v1650_v4 }
 0x1f2   : > { %900 = vrot.lane.b32.xlu0 %v1385_v39, %s3153_s8 }
 0x1f3   : > { %v1072_v55 = vpop.permute.xlu1 %1071 }
 0x1f4   : > { %1150 = vst.msk [vmem:[#allocation3 + $0x90] sm:$0xff] %vm1131_vm7, %v1072_v55  ;;  %v1074_v29 = vpop.permute.xlu0 %1073 }
 0x1f5   : > { %1667 = vrot.lane.b32.xlu1 %v1577_v56, %s3157_s22  ;;  %1151 = vst.msk [vmem:[#allocation3 + $0x98] sm:$0xff] %vm1131_vm7, %v1074_v29 }
 0x1f6   : > { %1669 = vrot.lane.b32.xlu0 %v1578_v12, %s3157_s22 }
 0x1f7   : > { %v1841_v59 = vpop.permute.xlu1 %1840 }
 0x1f8   : > { %1921 = vst.msk [vmem:[#allocation3 + $0x80] sm:$0xff] %vm1904_vm11, %v1841_v59  ;;  %v1843_v49 = vpop.permute.xlu0 %1842 }
 0x1f9   : > { %1091 = vrot.lane.b32.xlu1 %v1577_v56, %s3154_s9  ;;  %1922 = vst.msk [vmem:[#allocation3 + $0x88] sm:$0xff] %vm1904_vm11, %v1843_v49 }
 0x1fa   : > { %1093 = vrot.lane.b32.xlu0 %v1578_v12, %s3154_s9 }
 0x1fb   : > { %v1265_v41 = vpop.permute.xlu1 %1264 }
 0x1fc   : > { %1343 = vst.msk [vmem:[#allocation3 + $0x90] sm:$0xff] %vm1324_vm8, %v1265_v41  ;;  %v1459_v9 = vpop.permute.xlu0 %1458 }
 0x1fd   : > { %1860 = vrot.lane.b32.xlu1 %v1770_v32, %s3158_s12  ;;  %1537 = vst.msk [vmem:[#allocation3 + $0x90] sm:$0xff] %vm1518_vm9, %v1459_v9 }
 0x1fe   : > { %1862 = vrot.lane.b32.xlu0 %v1771_v20, %s3158_s12 }
 0x1ff   : > { %v1267_v14 = vpop.permute.xlu1 %1266  ;;  %v1953_v50 = vld [vmem:[#allocation3 + $0x80] sm:$0xff] }
 0x200   : > { %1344 = vst.msk [vmem:[#allocation3 + $0x98] sm:$0xff] %vm1324_vm8, %v1267_v14  ;;  %2963 = vmatprep.mubr.msk.f32.mxu1 %vm1974_vm12, %v1953_v50  ;;  %v1461_v48 = vpop.permute.xlu0 %1460  ;;  %v1954_v11 = vld [vmem:[#allocation3 + $0x88] sm:$0xff] }
 0x201   : > { %1284 = vrot.lane.b32.xlu1 %v1770_v32, %s3155_s10  ;;  %1538 = vst.msk [vmem:[#allocation3 + $0x98] sm:$0xff] %vm1518_vm9, %v1461_v48  ;;  %2964 = vmatmul.mubr.msk.f32.vlgmr.msra.gmra.mrb[0].mxu1 %vm1974_vm12, %v1954_v11 }
 0x202   : > { %1478 = vrot.lane.b32.xlu0 %v1386_v23, %s3156_s11 }
 0x203   : > { %v883_v58 = vpop.permute.xlu1 %882 }
 0x204   : > { %959 = vst.msk [vmem:[#allocation3 + $0xa0] sm:$0xff] %vm938_vm6, %v883_v58  ;;  %v885_v15 = vpop.permute.xlu0 %884 }
 0x205   : > { %1286 = vrot.lane.b32.xlu1 %v1771_v20, %s3155_s10  ;;  %960 = vst.msk [vmem:[#allocation3 + $0xa8] sm:$0xff] %vm938_vm6, %v885_v15 }
 0x206   : > { %1480 = vrot.lane.b32.xlu0 %v1387_v3, %s3156_s11 }
 0x207   : > { %v1652_v6 = vpop.permute.xlu1 %1651 }
 0x208   : > { %1730 = vst.msk [vmem:[#allocation3 + $0x90] sm:$0xff] %vm1711_vm10, %v1652_v6  ;;  %v1654_v33 = vpop.permute.xlu0 %1653 }
 0x209   : > { %902 = vrot.lane.b32.xlu1 %v1386_v23, %s3153_s8  ;;  %1731 = vst.msk [vmem:[#allocation3 + $0x98] sm:$0xff] %vm1711_vm10, %v1654_v33 }
 0x20a   : > { %904 = vrot.lane.b32.xlu0 %v1387_v3, %s3153_s8  ;;  %s3058_s8 = sshll.u32 %s3159_s5, 4  ;;  %s3059_s8 = int_to_ptr.vmem [resolvable:$false] %s3058_s8 }
 0x20b   : > { %v1076_v34 = vpop.permute.xlu1 %1075 }
 0x20c   : > { %1152 = vst.msk [vmem:[#allocation3 + $0xa0] sm:$0xff] %vm1131_vm7, %v1076_v34  ;;  %v1078_v43 = vpop.permute.xlu0 %1077 }
 0x20d   : > { %1671 = vrot.lane.b32.xlu1 %v1579_v61, %s3157_s22  ;;  %1153 = vst.msk [vmem:[#allocation3 + $0xa8] sm:$0xff] %vm1131_vm7, %v1078_v43 }
 0x20e   : > { %1673 = vrot.lane.b32.xlu0 %v1580_v40, %s3157_s22 }
 0x20f   : > { %v1845_v51 = vpop.permute.xlu1 %1844 }
 0x210   : > { %1923 = vst.msk [vmem:[#allocation3 + $0x90] sm:$0xff] %vm1904_vm11, %v1845_v51  ;;  %v1847_v54 = vpop.permute.xlu0 %1846 }
 0x211   : > { %1095 = vrot.lane.b32.xlu1 %v1579_v61, %s3154_s9  ;;  %1924 = vst.msk [vmem:[#allocation3 + $0x98] sm:$0xff] %vm1904_vm11, %v1847_v54 }
 0x212   : > { %1097 = vrot.lane.b32.xlu0 %v1580_v40, %s3154_s9  ;;  %s3060_s9 = scalar_lea.vmem %s3059_s8, 32 }
 0x213   : > { %v1269_v35 = vpop.permute.xlu1 %1268 }
 0x214   : > { %1345 = vst.msk [vmem:[#allocation3 + $0xa0] sm:$0xff] %vm1324_vm8, %v1269_v35  ;;  %v1463_v36 = vpop.permute.xlu0 %1462 }
 0x215   : > { %1864 = vrot.lane.b32.xlu1 %v1772_v13, %s3158_s12  ;;  %1539 = vst.msk [vmem:[#allocation3 + $0xa0] sm:$0xff] %vm1518_vm9, %v1463_v36 }
 0x216   : > { %1866 = vrot.lane.b32.xlu0 %v1773_v17, %s3158_s12 }
 0x217   : > { %v1271_v60 = vpop.permute.xlu1 %1270  ;;  %v1955_v0 = vld [vmem:[#allocation3 + $0x90] sm:$0xff] }
 0x218   : > { %1346 = vst.msk [vmem:[#allocation3 + $0xa8] sm:$0xff] %vm1324_vm8, %v1271_v60  ;;  %2966 = vmatprep.mubr.msk.f32.mxu1 %vm1974_vm12, %v1955_v0  ;;  %v1465_v26 = vpop.permute.xlu0 %1464  ;;  %v1956_v42 = vld [vmem:[#allocation3 + $0x98] sm:$0xff] }
 0x219   : > { %1288 = vrot.lane.b32.xlu1 %v1772_v13, %s3155_s10  ;;  %1540 = vst.msk [vmem:[#allocation3 + $0xa8] sm:$0xff] %vm1518_vm9, %v1465_v26  ;;  %2967 = vmatmul.mubr.msk.f32.gmra.mrb[2].mxu1 %vm1974_vm12, %v1956_v42 }
 0x21a   : > { %1482 = vrot.lane.b32.xlu0 %v1388_v37, %s3156_s11 }
 0x21b   : > { %v887_v47 = vpop.permute.xlu1 %886 }
 0x21c   : > { %961 = vst.msk [vmem:[#allocation3 + $0xb0] sm:$0xff] %vm938_vm6, %v887_v47  ;;  %v889_v8 = vpop.permute.xlu0 %888 }
 0x21d   : > { %1290 = vrot.lane.b32.xlu1 %v1773_v17, %s3155_s10  ;;  %962 = vst.msk [vmem:[#allocation3 + $0xb8] sm:$0xff] %vm938_vm6, %v889_v8  ;;  %s2854_s10 = sshll.u32 %s3207_s19, 4 }
 0x21e   : > { %1675 = vrot.lane.b32.xlu0 %v1581_v5, %s3157_s22  ;;  %s4351_s29 = scalar_lea.hbm %s4430_s3, %s2854_s10  ;;  %s4359_s6 = scalar_lea.hbm %s4431_s4, %s2854_s10 }
 0x21f   : > { %v1656_v45 = vpop.permute.xlu1 %1655 }
 0x220   : > { %1732 = vst.msk [vmem:[#allocation3 + $0xa0] sm:$0xff] %vm1711_vm10, %v1656_v45  ;;  %v1658_v22 = vpop.permute.xlu0 %1657  ;;  %v2941_v19 = vpop.f32.mrb[0].mxu0 }
 0x221   : > { %1484 = vrot.lane.b32.xlu1 %v1389_v31, %s3156_s11  ;;  %1733 = vst.msk [vmem:[#allocation3 + $0xa8] sm:$0xff] %vm1711_vm10, %v1658_v22  ;;  %v2302_v24 = vsel %vm2300_vm13, %v2941_v19, 0.0  ;;  %v2373_v62 = vmul.f32 %v2941_v19, %v2941_v19  ;;  %v2861_v46 = vpack.c.bf16 %v2941_v19, %v2941_v19  ;;  %v2141_v44 = vpop.f32.mrb[1].mxu0  ;;  %s200_s11 = scalar_lea.vmem [#allocation4], %s4341_s27 }
 0x222   : > { %v2301_v63 = vsel %vm2300_vm13, %v2141_v44, 0.0  ;;  %v2372_v53 = vmul.f32 %v2141_v44, %v2141_v44  ;;  %v2860_v25 = vpack.c.bf16 %v2141_v44, %v2141_v44  ;;  %1868 = vrot.lane.b32.xlu0 %v1774_v16, %s3158_s12  ;;  %s2660_s14 = sshll.u32 %s200_s11, 4  ;;  %s4353_s14 = int_to_ptr.vmem [resolvable:$true] %s2660_s14 }
 0x223   : > { %v1080_v52 = vpop.permute.xlu1 %1079  ;;  %v2405_v57 = vsel %vm2300_vm13, %v2373_v62, 0.0  ;;  %2604 = vst.msk [vmem:[%s4134_s13 + $0x4] sm:$0xf] %vm2602_vm14, %v2861_v46  ;;  %v2303_v18 = vadd.f32 %v2302_v24, %v2301_v63  ;;  %p3061_p0 = scmp.lt.s32.totalorder %s4353_s14, %s3059_s8 }
 0x224   : > { %1154 = vst.msk [vmem:[#allocation3 + $0xb0] sm:$0xff] %vm1131_vm7, %v1080_v52  ;;  %v1082_v28 = vpop.permute.xlu0 %1081  ;;  %v2404_v7 = vsel %vm2300_vm13, %v2372_v53, 0.0 }
 0x225   : > { %1677 = vrot.lane.b32.xlu1 %v1582_v2, %s3157_s22  ;;  %2603 = vst.msk [vmem:[%s4134_s13] sm:$0xf] %vm2602_vm14, %v2860_v25  ;;  %v2406_v10 = vadd.f32 %v2405_v57, %v2404_v7  ;;  %s2673_s22 = sshll.u32 %s206_s20, 4  ;;  %s4361_s22 = int_to_ptr.vmem [resolvable:$true] %s2673_s22 }
 0x226   : > { %1155 = vst.msk [vmem:[#allocation3 + $0xb8] sm:$0xff] %vm1131_vm7, %v1082_v28 }
 0x227   : > { %v1849_v30 = vpop.permute.xlu1 %1848 }
 0x228   : > { %1925 = vst.msk [vmem:[#allocation3 + $0xa0] sm:$0xff] %vm1904_vm11, %v1849_v30  ;;  %v1851_v38 = vpop.permute.xlu0 %1850 }
 0x229   : > { %1870 = vrot.lane.b32.xlu1 %v1775_v21, %s3158_s12  ;;  %1926 = vst.msk [vmem:[#allocation3 + $0xa8] sm:$0xff] %vm1904_vm11, %v1851_v38  ;;  %s3054_s12 = scalar_lea.vmem %s4353_s14, 16 }
 0x22a   : > { %p3055_p11 = scmp.ne.s32.totalorder %s4353_s14, %s3054_s12  ;;  %p3062_p1 = scmp.lt.s32.totalorder %s3060_s9, %s3054_s12 }
 0x22b   : > { %v1273_v39 = vpop.permute.xlu1 %1272 }
 0x22c   : > { %1347 = vst.msk [vmem:[#allocation3 + $0xb0] sm:$0xff] %vm1324_vm8, %v1273_v39  ;;  %v1467_v27 = vpop.permute.xlu0 %1466  ;;  %p3056_p12 = pnand %p3055_p11, %p3224_p5  ;;  %p3063_p2 = por %p3062_p1, %p3061_p0 }
 0x22d   : > { %1541 = vst.msk [vmem:[#allocation3 + $0xb0] sm:$0xff] %vm1518_vm9, %v1467_v27 }
 0x22e   : > { %p3057_p13 = pneg %p3056_p12 }
 0x22f   : > { %v1275_v1 = vpop.permute.xlu1 %1274  ;;  %v1957_v4 = vld [vmem:[#allocation3 + $0xa0] sm:$0xff] }
 0x230   : > { %1348 = vst.msk [vmem:[#allocation3 + $0xb8] sm:$0xff] %vm1324_vm8, %v1275_v1  ;;  %2969 = vmatprep.mubr.msk.f32.mxu1 %vm1974_vm12, %v1957_v4  ;;  %v1469_v56 = vpop.permute.xlu0 %1468  ;;  %v1958_v55 = vld [vmem:[#allocation3 + $0xa8] sm:$0xff]  ;;  %p3064_p3 = pnand %p3063_p2, %p3057_p13 }
 0x231   : > { %1542 = vst.msk [vmem:[#allocation3 + $0xb8] sm:$0xff] %vm1518_vm9, %v1469_v56  ;;  %2970 = vmatmul.mubr.msk.f32.gmra.mrb[4].mxu1 %vm1974_vm12, %v1958_v55 }
 0x233   : > { %v891_v12 = vpop.permute.xlu1 %890 }
 0x234   : > { %963 = vst.msk [vmem:[#allocation3 + $0xc0] sm:$0xff] %vm938_vm6, %v891_v12  ;;  %v893_v29 = vpop.permute.xlu0 %892  ;;  %v2944_v59 = vpop.f32.mrb[2].mxu0 }
 0x235   : > { %964 = vst.msk [vmem:[#allocation3 + $0xc8] sm:$0xff] %vm938_vm6, %v893_v29  ;;  %v2375_v49 = vmul.f32 %v2944_v59, %v2944_v59  ;;  %v2863_v32 = vpack.c.bf16 %v2944_v59, %v2944_v59  ;;  %v2151_v41 = vpop.f32.mrb[3].mxu0  ;;  %v2306_v20 = vsel %vm2300_vm13, %v2944_v59, 0.0 }
 0x236   : > { %v2304_v9 = vsel %vm2300_vm13, %v2151_v41, 0.0  ;;  %v2374_v14 = vmul.f32 %v2151_v41, %v2151_v41  ;;  %v2862_v50 = vpack.c.bf16 %v2151_v41, %v2151_v41 }
 0x237   : > { %v1660_v23 = vpop.permute.xlu1 %1659  ;;  %2606 = vst.msk [vmem:[%s4134_s13 + $0xc] sm:$0xf] %vm2602_vm14, %v2863_v32  ;;  %v2305_v48 = vadd.f32 %v2304_v9, %v2303_v18  ;;  %v2409_v11 = vsel %vm2300_vm13, %v2375_v49, 0.0 }
 0x238   : > { %1734 = vst.msk [vmem:[#allocation3 + $0xb0] sm:$0xff] %vm1711_vm10, %v1660_v23  ;;  %v2407_v58 = vsel %vm2300_vm13, %v2374_v14, 0.0  ;;  %v1662_v3 = vpop.permute.xlu0 %1661 }
 0x239   : > { %2605 = vst.msk [vmem:[%s4134_s13 + $0x8] sm:$0xf] %vm2602_vm14, %v2862_v50  ;;  %v2408_v15 = vadd.f32 %v2407_v58, %v2406_v10  ;;  %v2307_v6 = vadd.f32 %v2306_v20, %v2305_v48 }
 0x23a   : > { %1735 = vst.msk [vmem:[#allocation3 + $0xb8] sm:$0xff] %vm1711_vm10, %v1662_v3 }
 0x23b   : > { %v1084_v33 = vpop.permute.xlu1 %1083  ;;  %v2410_v61 = vadd.f32 %v2409_v11, %v2408_v15 }
 0x23c   : > { %1156 = vst.msk [vmem:[#allocation3 + $0xc0] sm:$0xff] %vm1131_vm7, %v1084_v33  ;;  %v1086_v34 = vpop.permute.xlu0 %1085 }
 0x23d   : > { %1157 = vst.msk [vmem:[#allocation3 + $0xc8] sm:$0xff] %vm1131_vm7, %v1086_v34 }
 0x23f   : > { %v1853_v40 = vpop.permute.xlu1 %1852 }
 0x240   : > { %1927 = vst.msk [vmem:[#allocation3 + $0xb0] sm:$0xff] %vm1904_vm11, %v1853_v40  ;;  %v1855_v43 = vpop.permute.xlu0 %1854 }
 0x241   : > { %1928 = vst.msk [vmem:[#allocation3 + $0xb8] sm:$0xff] %vm1904_vm11, %v1855_v43 }
 0x243   : > { %v1277_v51 = vpop.permute.xlu1 %1276 }
 0x244   : > { %1349 = vst.msk [vmem:[#allocation3 + $0xc0] sm:$0xff] %vm1324_vm8, %v1277_v51  ;;  %v1471_v54 = vpop.permute.xlu0 %1470 }
 0x245   : > { %1543 = vst.msk [vmem:[#allocation3 + $0xc0] sm:$0xff] %vm1518_vm9, %v1471_v54 }
 0x247   : > { %v1279_v13 = vpop.permute.xlu1 %1278  ;;  %v1959_v35 = vld [vmem:[#allocation3 + $0xb0] sm:$0xff] }
 0x248   : > { %1350 = vst.msk [vmem:[#allocation3 + $0xc8] sm:$0xff] %vm1324_vm8, %v1279_v13  ;;  %2972 = vmatprep.mubr.msk.f32.mxu1 %vm1974_vm12, %v1959_v35  ;;  %v1473_v17 = vpop.permute.xlu0 %1472  ;;  %v2947_v36 = vpop.f32.mrb[4].mxu0  ;;  %v1960_v60 = vld [vmem:[#allocation3 + $0xb8] sm:$0xff] }
 0x249   : > { %1544 = vst.msk [vmem:[#allocation3 + $0xc8] sm:$0xff] %vm1518_vm9, %v1473_v17  ;;  %v2377_v0 = vmul.f32 %v2947_v36, %v2947_v36  ;;  %v2865_v37 = vpack.c.bf16 %v2947_v36, %v2947_v36  ;;  %v2161_v26 = vpop.f32.mrb[5].mxu0  ;;  %2973 = vmatmul.mubr.msk.f32.gmra.mrb[6].mxu1 %vm1974_vm12, %v1960_v60  ;;  %v2310_v42 = vsel %vm2300_vm13, %v2947_v36, 0.0 }
 0x24a   : > { %v2308_v47 = vsel %vm2300_vm13, %v2161_v26, 0.0  ;;  %v2376_v5 = vmul.f32 %v2161_v26, %v2161_v26  ;;  %v2864_v8 = vpack.c.bf16 %v2161_v26, %v2161_v26 }
 0x24b   : > { %v895_v31 = vpop.permute.xlu1 %894  ;;  %2608 = vst.msk [vmem:[%s4134_s13 + $0x14] sm:$0xf] %vm2602_vm14, %v2865_v37  ;;  %v2309_v45 = vadd.f32 %v2308_v47, %v2307_v6  ;;  %v2413_v16 = vsel %vm2300_vm13, %v2377_v0, 0.0 }
 0x24c   : > { %965 = vst.msk [vmem:[#allocation3 + $0xd0] sm:$0xff] %vm938_vm6, %v895_v31  ;;  %v2411_v22 = vsel %vm2300_vm13, %v2376_v5, 0.0  ;;  %v897_v19 = vpop.permute.xlu0 %896 }
 0x24d   : > { %2607 = vst.msk [vmem:[%s4134_s13 + $0x10] sm:$0xf] %vm2602_vm14, %v2864_v8  ;;  %v2412_v24 = vadd.f32 %v2411_v22, %v2410_v61  ;;  %v2311_v62 = vadd.f32 %v2310_v42, %v2309_v45 }
 0x24e   : > { %966 = vst.msk [vmem:[#allocation3 + $0xd8] sm:$0xff] %vm938_vm6, %v897_v19 }
 0x24f   : > { %v1664_v46 = vpop.permute.xlu1 %1663  ;;  %v2414_v2 = vadd.f32 %v2413_v16, %v2412_v24 }
 0x250   : > { %1736 = vst.msk [vmem:[#allocation3 + $0xc0] sm:$0xff] %vm1711_vm10, %v1664_v46  ;;  %v1666_v44 = vpop.permute.xlu0 %1665 }
 0x251   : > { %1737 = vst.msk [vmem:[#allocation3 + $0xc8] sm:$0xff] %vm1711_vm10, %v1666_v44 }
 0x253   : > { %v1088_v52 = vpop.permute.xlu1 %1087 }
 0x254   : > { %1158 = vst.msk [vmem:[#allocation3 + $0xd0] sm:$0xff] %vm1131_vm7, %v1088_v52  ;;  %v1090_v63 = vpop.permute.xlu0 %1089 }
 0x255   : > { %1159 = vst.msk [vmem:[#allocation3 + $0xd8] sm:$0xff] %vm1131_vm7, %v1090_v63 }
 0x257   : > { %v1857_v53 = vpop.permute.xlu1 %1856 }
 0x258   : > { %1929 = vst.msk [vmem:[#allocation3 + $0xc0] sm:$0xff] %vm1904_vm11, %v1857_v53  ;;  %v1859_v25 = vpop.permute.xlu0 %1858 }
 0x259   : > { %1930 = vst.msk [vmem:[#allocation3 + $0xc8] sm:$0xff] %vm1904_vm11, %v1859_v25 }
 0x25b   : > { %v1281_v57 = vpop.permute.xlu1 %1280 }
 0x25c   : > { %1351 = vst.msk [vmem:[#allocation3 + $0xd0] sm:$0xff] %vm1324_vm8, %v1281_v57  ;;  %v1475_v18 = vpop.permute.xlu0 %1474  ;;  %v2950_v28 = vpop.f32.mrb[6].mxu0 }
 0x25d   : > { %1545 = vst.msk [vmem:[#allocation3 + $0xd0] sm:$0xff] %vm1518_vm9, %v1475_v18  ;;  %v2379_v7 = vmul.f32 %v2950_v28, %v2950_v28  ;;  %v2867_v10 = vpack.c.bf16 %v2950_v28, %v2950_v28  ;;  %v2171_v21 = vpop.f32.mrb[7].mxu0  ;;  %v2314_v30 = vsel %vm2300_vm13, %v2950_v28, 0.0 }
 0x25e   : > { %v2312_v38 = vsel %vm2300_vm13, %v2171_v21, 0.0  ;;  %v2378_v39 = vmul.f32 %v2171_v21, %v2171_v21  ;;  %v2866_v27 = vpack.c.bf16 %v2171_v21, %v2171_v21 }
 0x25f   : > { %v1283_v1 = vpop.permute.xlu1 %1282  ;;  %v1961_v4 = vld [vmem:[#allocation3 + $0xc0] sm:$0xff]  ;;  %2610 = vst.msk [vmem:[%s4134_s13 + $0x1c] sm:$0xf] %vm2602_vm14, %v2867_v10  ;;  %v2313_v56 = vadd.f32 %v2312_v38, %v2311_v62  ;;  %v2417_v55 = vsel %vm2300_vm13, %v2379_v7, 0.0 }
 0x260   : > { %1352 = vst.msk [vmem:[#allocation3 + $0xd8] sm:$0xff] %vm1324_vm8, %v1283_v1  ;;  %2975 = vmatprep.mubr.msk.f32.mxu1 %vm1974_vm12, %v1961_v4  ;;  %v2415_v12 = vsel %vm2300_vm13, %v2378_v39, 0.0  ;;  %v1477_v29 = vpop.permute.xlu0 %1476  ;;  %v1962_v59 = vld [vmem:[#allocation3 + $0xc8] sm:$0xff] }
 0x261   : > { %2609 = vst.msk [vmem:[%s4134_s13 + $0x18] sm:$0xf] %vm2602_vm14, %v2866_v27  ;;  %v2416_v49 = vadd.f32 %v2415_v12, %v2414_v2  ;;  %2976 = vmatmul.mubr.msk.f32.gmra.mrb[8].mxu1 %vm1974_vm12, %v1962_v59  ;;  %v2315_v32 = vadd.f32 %v2314_v30, %v2313_v56 }
 0x262   : > { %1546 = vst.msk [vmem:[#allocation3 + $0xd8] sm:$0xff] %vm1518_vm9, %v1477_v29 }
 0x263   : > { %v899_v41 = vpop.permute.xlu1 %898  ;;  %v2418_v20 = vadd.f32 %v2417_v55, %v2416_v49 }
 0x264   : > { %967 = vst.msk [vmem:[#allocation3 + $0xe0] sm:$0xff] %vm938_vm6, %v899_v41  ;;  %v901_v9 = vpop.permute.xlu0 %900 }
 0x265   : > { %968 = vst.msk [vmem:[#allocation3 + $0xe8] sm:$0xff] %vm938_vm6, %v901_v9 }
 0x267   : > { %v1668_v14 = vpop.permute.xlu1 %1667 }
 0x268   : > { %1738 = vst.msk [vmem:[#allocation3 + $0xd0] sm:$0xff] %vm1711_vm10, %v1668_v14  ;;  %v1670_v50 = vpop.permute.xlu0 %1669 }
 0x269   : > { %1739 = vst.msk [vmem:[#allocation3 + $0xd8] sm:$0xff] %vm1711_vm10, %v1670_v50 }
 0x26b   : > { %v1092_v23 = vpop.permute.xlu1 %1091 }
 0x26c   : > { %1160 = vst.msk [vmem:[#allocation3 + $0xe0] sm:$0xff] %vm1131_vm7, %v1092_v23  ;;  %v1094_v48 = vpop.permute.xlu0 %1093 }
 0x26d   : > { %1161 = vst.msk [vmem:[#allocation3 + $0xe8] sm:$0xff] %vm1131_vm7, %v1094_v48 }
 0x26f   : > { %v1861_v11 = vpop.permute.xlu1 %1860 }
 0x270   : > { %1931 = vst.msk [vmem:[#allocation3 + $0xd0] sm:$0xff] %vm1904_vm11, %v1861_v11  ;;  %v1863_v58 = vpop.permute.xlu0 %1862 }
 0x271   : > { %1932 = vst.msk [vmem:[#allocation3 + $0xd8] sm:$0xff] %vm1904_vm11, %v1863_v58 }
 0x273   : > { %v1285_v3 = vpop.permute.xlu1 %1284 }
 0x274   : > { %1353 = vst.msk [vmem:[#allocation3 + $0xe0] sm:$0xff] %vm1324_vm8, %v1285_v3  ;;  %v1479_v15 = vpop.permute.xlu0 %1478  ;;  %v2953_v6 = vpop.f32.mrb[8].mxu0 }
 0x275   : > { %1547 = vst.msk [vmem:[#allocation3 + $0xe0] sm:$0xff] %vm1518_vm9, %v1479_v15  ;;  %v2381_v33 = vmul.f32 %v2953_v6, %v2953_v6  ;;  %v2869_v61 = vpack.c.bf16 %v2953_v6, %v2953_v6  ;;  %v2181_v34 = vpop.f32.mrb[9].mxu0  ;;  %v2318_v40 = vsel %vm2300_vm13, %v2953_v6, 0.0 }
 0x276   : > { %v2316_v43 = vsel %vm2300_vm13, %v2181_v34, 0.0  ;;  %v2380_v51 = vmul.f32 %v2181_v34, %v2181_v34  ;;  %v2868_v54 = vpack.c.bf16 %v2181_v34, %v2181_v34 }
 0x277   : > { %v1287_v13 = vpop.permute.xlu1 %1286  ;;  %v1963_v35 = vld [vmem:[#allocation3 + $0xd0] sm:$0xff]  ;;  %2612 = vst.msk [vmem:[%s4134_s13 + $0x24] sm:$0xf] %vm2602_vm14, %v2869_v61  ;;  %v2317_v17 = vadd.f32 %v2316_v43, %v2315_v32  ;;  %v2421_v36 = vsel %vm2300_vm13, %v2381_v33, 0.0 }
 0x278   : > { %1354 = vst.msk [vmem:[#allocation3 + $0xe8] sm:$0xff] %vm1324_vm8, %v1287_v13  ;;  %2978 = vmatprep.mubr.msk.f32.mxu1 %vm1974_vm12, %v1963_v35  ;;  %v2419_v60 = vsel %vm2300_vm13, %v2380_v51, 0.0  ;;  %v1481_v0 = vpop.permute.xlu0 %1480  ;;  %v1964_v37 = vld [vmem:[#allocation3 + $0xd8] sm:$0xff] }
 0x279   : > { %2611 = vst.msk [vmem:[%s4134_s13 + $0x20] sm:$0xf] %vm2602_vm14, %v2868_v54  ;;  %v2420_v26 = vadd.f32 %v2419_v60, %v2418_v20  ;;  %2979 = vmatmul.mubr.msk.f32.gmra.mrb[10].mxu1 %vm1974_vm12, %v1964_v37  ;;  %v2319_v42 = vadd.f32 %v2318_v40, %v2317_v17 }
 0x27a   : > { %1548 = vst.msk [vmem:[#allocation3 + $0xe8] sm:$0xff] %vm1518_vm9, %v1481_v0 }
 0x27b   : > { %v903_v47 = vpop.permute.xlu1 %902  ;;  %v2422_v5 = vadd.f32 %v2421_v36, %v2420_v26 }
 0x27c   : > { %969 = vst.msk [vmem:[#allocation3 + $0xf0] sm:$0xff] %vm938_vm6, %v903_v47  ;;  %v905_v8 = vpop.permute.xlu0 %904 }
 0x27d   : > { %970 = vst.msk [vmem:[#allocation3 + $0xf8] sm:$0xff] %vm938_vm6, %v905_v8 }
 0x27f   : > { %v1672_v31 = vpop.permute.xlu1 %1671 }
 0x280   : > { %1740 = vst.msk [vmem:[#allocation3 + $0xe0] sm:$0xff] %vm1711_vm10, %v1672_v31  ;;  %v1674_v45 = vpop.permute.xlu0 %1673 }
 0x281   : > { %1741 = vst.msk [vmem:[#allocation3 + $0xe8] sm:$0xff] %vm1711_vm10, %v1674_v45 }
 0x283   : > { %v1096_v16 = vpop.permute.xlu1 %1095 }
 0x284   : > { %1162 = vst.msk [vmem:[#allocation3 + $0xf0] sm:$0xff] %vm1131_vm7, %v1096_v16  ;;  %v1098_v22 = vpop.permute.xlu0 %1097 }
 0x285   : > { %1163 = vst.msk [vmem:[#allocation3 + $0xf8] sm:$0xff] %vm1131_vm7, %v1098_v22 }
 0x287   : > { %v1865_v19 = vpop.permute.xlu1 %1864 }
 0x288   : > { %1933 = vst.msk [vmem:[#allocation3 + $0xe0] sm:$0xff] %vm1904_vm11, %v1865_v19  ;;  %v1867_v24 = vpop.permute.xlu0 %1866 }
 0x289   : > { %1934 = vst.msk [vmem:[#allocation3 + $0xe8] sm:$0xff] %vm1904_vm11, %v1867_v24 }
 0x28b   : > { %v1289_v62 = vpop.permute.xlu1 %1288 }
 0x28c   : > { %1355 = vst.msk [vmem:[#allocation3 + $0xf0] sm:$0xff] %vm1324_vm8, %v1289_v62  ;;  %v2956_v46 = vpop.f32.mrb[10].mxu0  ;;  %v1483_v2 = vpop.permute.xlu0 %1482 }
 0x28d   : > { %v2383_v44 = vmul.f32 %v2956_v46, %v2956_v46  ;;  %v2871_v52 = vpack.c.bf16 %v2956_v46, %v2956_v46  ;;  %v2191_v63 = vpop.f32.mrb[11].mxu0  ;;  %1549 = vst.msk [vmem:[#allocation3 + $0xf0] sm:$0xff] %vm1518_vm9, %v1483_v2  ;;  %v2322_v53 = vsel %vm2300_vm13, %v2956_v46, 0.0 }
 0x28e   : > { %v2320_v25 = vsel %vm2300_vm13, %v2191_v63, 0.0  ;;  %v2382_v57 = vmul.f32 %v2191_v63, %v2191_v63  ;;  %v2870_v18 = vpack.c.bf16 %v2191_v63, %v2191_v63 }
 0x28f   : > { %v1291_v28 = vpop.permute.xlu1 %1290  ;;  %v1965_v7 = vld [vmem:[#allocation3 + $0xe0] sm:$0xff]  ;;  %2614 = vst.msk [vmem:[%s4134_s13 + $0x2c] sm:$0xf] %vm2602_vm14, %v2871_v52  ;;  %v2321_v10 = vadd.f32 %v2320_v25, %v2319_v42  ;;  %v2425_v21 = vsel %vm2300_vm13, %v2383_v44, 0.0 }
 0x290   : > { %1356 = vst.msk [vmem:[#allocation3 + $0xf8] sm:$0xff] %vm1324_vm8, %v1291_v28  ;;  %2981 = vmatprep.mubr.msk.f32.mxu1 %vm1974_vm12, %v1965_v7  ;;  %v2423_v30 = vsel %vm2300_vm13, %v2382_v57, 0.0  ;;  %v1966_v38 = vld [vmem:[#allocation3 + $0xe8] sm:$0xff]  ;;  %v1676_v39 = vpop.permute.xlu0 %1675 }
 0x291   : > { %2613 = vst.msk [vmem:[%s4134_s13 + $0x28] sm:$0xf] %vm2602_vm14, %v2870_v18  ;;  %v2424_v27 = vadd.f32 %v2423_v30, %v2422_v5  ;;  %2982 = vmatmul.mubr.msk.f32.gmra.mrb[12].mxu1 %vm1974_vm12, %v1966_v38  ;;  %v2323_v1 = vadd.f32 %v2322_v53, %v2321_v10 }
 0x292   : > { %1742 = vst.msk [vmem:[#allocation3 + $0xf0] sm:$0xff] %vm1711_vm10, %v1676_v39 }
 0x293   : > { %v1485_v4 = vpop.permute.xlu1 %1484  ;;  %v2426_v56 = vadd.f32 %v2425_v21, %v2424_v27 }
 0x294   : > { %1550 = vst.msk [vmem:[#allocation3 + $0xf8] sm:$0xff] %vm1518_vm9, %v1485_v4  ;;  %v1869_v55 = vpop.permute.xlu0 %1868 }
 0x295   : > { %1935 = vst.msk [vmem:[#allocation3 + $0xf0] sm:$0xff] %vm1904_vm11, %v1869_v55 }
 0x297   : > { %v1678_v12 = vpop.permute.xlu1 %1677 }
 0x298   : > { %1743 = vst.msk [vmem:[#allocation3 + $0xf8] sm:$0xff] %vm1711_vm10, %v1678_v12 }
 0x29b   : > { %v1871_v29 = vpop.permute.xlu1 %1870 }
 0x29c   : > { %1936 = vst.msk [vmem:[#allocation3 + $0xf8] sm:$0xff] %vm1904_vm11, %v1871_v29  ;;  %v1967_v59 = vld [vmem:[#allocation3 + $0xf0] sm:$0xff] }
 0x29d   : > { %2984 = vmatprep.mubr.msk.f32.mxu1 %vm1974_vm12, %v1967_v59 }
 0x2a3   : > { %v1968_v49 = vld [vmem:[#allocation3 + $0xf8] sm:$0xff] }
 0x2a4   : > { %2985 = vmatmul.mubr.msk.f32.gmra.mrb[14].mxu1 %vm1974_vm12, %v1968_v49  ;;  %v2959_v32 = vpop.f32.mrb[12].mxu0 }
 0x2a5   : > { %v2385_v41 = vmul.f32 %v2959_v32, %v2959_v32  ;;  %v2873_v20 = vpack.c.bf16 %v2959_v32, %v2959_v32  ;;  %v2201_v9 = vpop.f32.mrb[13].mxu0  ;;  %v2326_v14 = vsel %vm2300_vm13, %v2959_v32, 0.0 }
 0x2a6   : > { %v2324_v50 = vsel %vm2300_vm13, %v2201_v9, 0.0  ;;  %v2384_v23 = vmul.f32 %v2201_v9, %v2201_v9  ;;  %v2872_v48 = vpack.c.bf16 %v2201_v9, %v2201_v9 }
 0x2a7   : > { %2616 = vst.msk [vmem:[%s4134_s13 + $0x34] sm:$0xf] %vm2602_vm14, %v2873_v20  ;;  %v2325_v11 = vadd.f32 %v2324_v50, %v2323_v1  ;;  %v2429_v58 = vsel %vm2300_vm13, %v2385_v41, 0.0 }
 0x2a8   : > { %v2427_v3 = vsel %vm2300_vm13, %v2384_v23, 0.0  ;;  %2615 = vst.msk [vmem:[%s4134_s13 + $0x30] sm:$0xf] %vm2602_vm14, %v2872_v48 }
 0x2a9   : > { %v2428_v15 = vadd.f32 %v2427_v3, %v2426_v56  ;;  %v2327_v6 = vadd.f32 %v2326_v14, %v2325_v11 }
 0x2ab   : > { %v2430_v33 = vadd.f32 %v2429_v58, %v2428_v15 }
 0x2bc   : > { %v2962_v61 = vpop.f32.mrb[14].mxu0 }
 0x2bd   : > { %v2387_v34 = vmul.f32 %v2962_v61, %v2962_v61  ;;  %v2875_v40 = vpack.c.bf16 %v2962_v61, %v2962_v61  ;;  %v2211_v43 = vpop.f32.mrb[15].mxu0  ;;  %v2330_v51 = vsel %vm2300_vm13, %v2962_v61, 0.0 }
 0x2be   : > { %v2328_v54 = vsel %vm2300_vm13, %v2211_v43, 0.0  ;;  %v2386_v13 = vmul.f32 %v2211_v43, %v2211_v43  ;;  %v2874_v35 = vpack.c.bf16 %v2211_v43, %v2211_v43 }
 0x2bf   : > { %2618 = vst.msk [vmem:[%s4134_s13 + $0x3c] sm:$0xf] %vm2602_vm14, %v2875_v40  ;;  %v2329_v17 = vadd.f32 %v2328_v54, %v2327_v6  ;;  %v2433_v36 = vsel %vm2300_vm13, %v2387_v34, 0.0 }
 0x2c0   : > { %v2431_v60 = vsel %vm2300_vm13, %v2386_v13, 0.0  ;;  %2617 = vst.msk [vmem:[%s4134_s13 + $0x38] sm:$0xf] %vm2602_vm14, %v2874_v35 }
 0x2c1   : > { %v2331_v0 = vadd.f32 %v2330_v51, %v2329_v17  ;;  %v2432_v37 = vadd.f32 %v2431_v60, %v2430_v33 }
 0x2c3   : > { %v2434_v26 = vadd.f32 %v2433_v36, %v2432_v37 }
 0x2d4   : > { %v2965_v42 = vpop.f32.mrb[0].mxu1 }
 0x2d5   : > { %v2389_v47 = vmul.f32 %v2965_v42, %v2965_v42  ;;  %v2877_v5 = vpack.c.bf16 %v2965_v42, %v2965_v42  ;;  %v2221_v8 = vpop.f32.mrb[1].mxu1  ;;  %v2334_v31 = vsel %vm2300_vm13, %v2965_v42, 0.0 }
 0x2d6   : > { %v2332_v45 = vsel %vm2300_vm13, %v2221_v8, 0.0  ;;  %v2388_v16 = vmul.f32 %v2221_v8, %v2221_v8  ;;  %v2876_v22 = vpack.c.bf16 %v2221_v8, %v2221_v8 }
 0x2d7   : > { %2620 = vst.msk [vmem:[%s4134_s13 + $0x44] sm:$0xf] %vm2602_vm14, %v2877_v5  ;;  %v2333_v19 = vadd.f32 %v2332_v45, %v2331_v0  ;;  %v2437_v24 = vsel %vm2300_vm13, %v2389_v47, 0.0 }
 0x2d8   : > { %v2435_v62 = vsel %vm2300_vm13, %v2388_v16, 0.0  ;;  %2619 = vst.msk [vmem:[%s4134_s13 + $0x40] sm:$0xf] %vm2602_vm14, %v2876_v22 }
 0x2d9   : > { %v2436_v46 = vadd.f32 %v2435_v62, %v2434_v26  ;;  %v2335_v2 = vadd.f32 %v2334_v31, %v2333_v19 }
 0x2db   : > { %v2438_v44 = vadd.f32 %v2437_v24, %v2436_v46 }
 0x2ec   : > { %v2968_v52 = vpop.f32.mrb[2].mxu1 }
 0x2ed   : > { %v2391_v63 = vmul.f32 %v2968_v52, %v2968_v52  ;;  %v2879_v53 = vpack.c.bf16 %v2968_v52, %v2968_v52  ;;  %v2231_v25 = vpop.f32.mrb[3].mxu1  ;;  %v2338_v57 = vsel %vm2300_vm13, %v2968_v52, 0.0 }
 0x2ee   : > { %v2336_v18 = vsel %vm2300_vm13, %v2231_v25, 0.0  ;;  %v2390_v28 = vmul.f32 %v2231_v25, %v2231_v25  ;;  %v2878_v7 = vpack.c.bf16 %v2231_v25, %v2231_v25 }
 0x2ef   : > { %2622 = vst.msk [vmem:[%s4134_s13 + $0x4c] sm:$0xf] %vm2602_vm14, %v2879_v53  ;;  %v2337_v10 = vadd.f32 %v2336_v18, %v2335_v2  ;;  %v2441_v21 = vsel %vm2300_vm13, %v2391_v63, 0.0 }
 0x2f0   : > { %v2439_v30 = vsel %vm2300_vm13, %v2390_v28, 0.0  ;;  %2621 = vst.msk [vmem:[%s4134_s13 + $0x48] sm:$0xf] %vm2602_vm14, %v2878_v7 }
 0x2f1   : > { %v2440_v38 = vadd.f32 %v2439_v30, %v2438_v44  ;;  %v2339_v39 = vadd.f32 %v2338_v57, %v2337_v10 }
 0x2f3   : > { %v2442_v27 = vadd.f32 %v2441_v21, %v2440_v38 }
 0x304   : > { %v2971_v1 = vpop.f32.mrb[4].mxu1 }
 0x305   : > { %v2393_v4 = vmul.f32 %v2971_v1, %v2971_v1  ;;  %v2881_v56 = vpack.c.bf16 %v2971_v1, %v2971_v1  ;;  %v2241_v55 = vpop.f32.mrb[5].mxu1  ;;  %v2342_v12 = vsel %vm2300_vm13, %v2971_v1, 0.0 }
 0x306   : > { %v2340_v29 = vsel %vm2300_vm13, %v2241_v55, 0.0  ;;  %v2392_v59 = vmul.f32 %v2241_v55, %v2241_v55  ;;  %v2880_v49 = vpack.c.bf16 %v2241_v55, %v2241_v55 }
 0x307   : > { %2624 = vst.msk [vmem:[%s4134_s13 + $0x54] sm:$0xf] %vm2602_vm14, %v2881_v56  ;;  %v2341_v32 = vadd.f32 %v2340_v29, %v2339_v39  ;;  %v2445_v41 = vsel %vm2300_vm13, %v2393_v4, 0.0 }
 0x308   : > { %v2443_v20 = vsel %vm2300_vm13, %v2392_v59, 0.0  ;;  %2623 = vst.msk [vmem:[%s4134_s13 + $0x50] sm:$0xf] %vm2602_vm14, %v2880_v49 }
 0x309   : > { %v2444_v9 = vadd.f32 %v2443_v20, %v2442_v27  ;;  %v2343_v14 = vadd.f32 %v2342_v12, %v2341_v32 }
 0x30b   : > { %v2446_v50 = vadd.f32 %v2445_v41, %v2444_v9 }
 0x31c   : > { %v2974_v23 = vpop.f32.mrb[6].mxu1 }
 0x31d   : > { %v2395_v48 = vmul.f32 %v2974_v23, %v2974_v23  ;;  %v2883_v11 = vpack.c.bf16 %v2974_v23, %v2974_v23  ;;  %v2251_v58 = vpop.f32.mrb[7].mxu1  ;;  %v2346_v3 = vsel %vm2300_vm13, %v2974_v23, 0.0 }
 0x31e   : > { %v2344_v15 = vsel %vm2300_vm13, %v2251_v58, 0.0  ;;  %v2394_v6 = vmul.f32 %v2251_v58, %v2251_v58  ;;  %v2882_v33 = vpack.c.bf16 %v2251_v58, %v2251_v58 }
 0x31f   : > { %2626 = vst.msk [vmem:[%s4134_s13 + $0x5c] sm:$0xf] %vm2602_vm14, %v2883_v11  ;;  %v2345_v61 = vadd.f32 %v2344_v15, %v2343_v14  ;;  %v2449_v34 = vsel %vm2300_vm13, %v2395_v48, 0.0 }
 0x320   : > { %v2447_v40 = vsel %vm2300_vm13, %v2394_v6, 0.0  ;;  %2625 = vst.msk [vmem:[%s4134_s13 + $0x58] sm:$0xf] %vm2602_vm14, %v2882_v33 }
 0x321   : > { %v2448_v43 = vadd.f32 %v2447_v40, %v2446_v50  ;;  %v2347_v51 = vadd.f32 %v2346_v3, %v2345_v61 }
 0x323   : > { %v2450_v54 = vadd.f32 %v2449_v34, %v2448_v43 }
 0x334   : > { %v2977_v13 = vpop.f32.mrb[8].mxu1 }
 0x335   : > { %v2397_v35 = vmul.f32 %v2977_v13, %v2977_v13  ;;  %v2885_v17 = vpack.c.bf16 %v2977_v13, %v2977_v13  ;;  %v2261_v36 = vpop.f32.mrb[9].mxu1  ;;  %v2350_v60 = vsel %vm2300_vm13, %v2977_v13, 0.0 }
 0x336   : > { %v2348_v0 = vsel %vm2300_vm13, %v2261_v36, 0.0  ;;  %v2396_v37 = vmul.f32 %v2261_v36, %v2261_v36  ;;  %v2884_v26 = vpack.c.bf16 %v2261_v36, %v2261_v36 }
 0x337   : > { %2628 = vst.msk [vmem:[%s4134_s13 + $0x64] sm:$0xf] %vm2602_vm14, %v2885_v17  ;;  %v2349_v42 = vadd.f32 %v2348_v0, %v2347_v51  ;;  %v2453_v47 = vsel %vm2300_vm13, %v2397_v35, 0.0 }
 0x338   : > { %v2451_v5 = vsel %vm2300_vm13, %v2396_v37, 0.0  ;;  %2627 = vst.msk [vmem:[%s4134_s13 + $0x60] sm:$0xf] %vm2602_vm14, %v2884_v26 }
 0x339   : > { %v2452_v8 = vadd.f32 %v2451_v5, %v2450_v54  ;;  %v2351_v31 = vadd.f32 %v2350_v60, %v2349_v42 }
 0x33b   : > { %v2454_v45 = vadd.f32 %v2453_v47, %v2452_v8 }
 0x34c   : > { %v2980_v16 = vpop.f32.mrb[10].mxu1 }
 0x34d   : > { %v2399_v22 = vmul.f32 %v2980_v16, %v2980_v16  ;;  %v2887_v19 = vpack.c.bf16 %v2980_v16, %v2980_v16  ;;  %v2271_v24 = vpop.f32.mrb[11].mxu1  ;;  %v2354_v62 = vsel %vm2300_vm13, %v2980_v16, 0.0 }
 0x34e   : > { %v2352_v46 = vsel %vm2300_vm13, %v2271_v24, 0.0  ;;  %v2398_v2 = vmul.f32 %v2271_v24, %v2271_v24  ;;  %v2886_v44 = vpack.c.bf16 %v2271_v24, %v2271_v24 }
 0x34f   : > { %2630 = vst.msk [vmem:[%s4134_s13 + $0x6c] sm:$0xf] %vm2602_vm14, %v2887_v19  ;;  %v2353_v52 = vadd.f32 %v2352_v46, %v2351_v31  ;;  %v2457_v63 = vsel %vm2300_vm13, %v2399_v22, 0.0 }
 0x350   : > { %v2455_v53 = vsel %vm2300_vm13, %v2398_v2, 0.0  ;;  %2629 = vst.msk [vmem:[%s4134_s13 + $0x68] sm:$0xf] %vm2602_vm14, %v2886_v44 }
 0x351   : > { %v2456_v25 = vadd.f32 %v2455_v53, %v2454_v45  ;;  %v2355_v57 = vadd.f32 %v2354_v62, %v2353_v52 }
 0x353   : > { %v2458_v18 = vadd.f32 %v2457_v63, %v2456_v25 }
 0x364   : > { %v2983_v28 = vpop.f32.mrb[12].mxu1 }
 0x365   : > { %v2401_v7 = vmul.f32 %v2983_v28, %v2983_v28  ;;  %v2889_v10 = vpack.c.bf16 %v2983_v28, %v2983_v28  ;;  %v2281_v21 = vpop.f32.mrb[13].mxu1  ;;  %v2358_v30 = vsel %vm2300_vm13, %v2983_v28, 0.0 }
 0x366   : > { %v2356_v38 = vsel %vm2300_vm13, %v2281_v21, 0.0  ;;  %v2400_v39 = vmul.f32 %v2281_v21, %v2281_v21  ;;  %v2888_v27 = vpack.c.bf16 %v2281_v21, %v2281_v21 }
 0x367   : > { %2632 = vst.msk [vmem:[%s4134_s13 + $0x74] sm:$0xf] %vm2602_vm14, %v2889_v10  ;;  %v2357_v1 = vadd.f32 %v2356_v38, %v2355_v57  ;;  %v2461_v4 = vsel %vm2300_vm13, %v2401_v7, 0.0 }
 0x368   : > { %v2459_v56 = vsel %vm2300_vm13, %v2400_v39, 0.0  ;;  %2631 = vst.msk [vmem:[%s4134_s13 + $0x70] sm:$0xf] %vm2602_vm14, %v2888_v27 }
 0x369   : > { %v2460_v55 = vadd.f32 %v2459_v56, %v2458_v18  ;;  %v2359_v12 = vadd.f32 %v2358_v30, %v2357_v1 }
 0x36b   : > { %v2462_v29 = vadd.f32 %v2461_v4, %v2460_v55 }
 0x377   : > { %v2986_v59 = vpop.f32.mrb[14].mxu1 }
 0x378   : > { %v2891_v49 = vpack.c.bf16 %v2986_v59, %v2986_v59  ;;  %v2291_v32 = vpop.f32.mrb[15].mxu1  ;;  %v2403_v41 = vmul.f32 %v2986_v59, %v2986_v59  ;;  %v2362_v23 = vsel %vm2300_vm13, %v2986_v59, 0.0 }
 0x379   : > { %v2360_v20 = vsel %vm2300_vm13, %v2291_v32, 0.0  ;;  %v2402_v9 = vmul.f32 %v2291_v32, %v2291_v32  ;;  %v2890_v14 = vpack.c.bf16 %v2291_v32, %v2291_v32 }
 0x37a   : > { %2634 = vst.msk [vmem:[%s4134_s13 + $0x7c] sm:$0xf] %vm2602_vm14, %v2891_v49  ;;  %v2361_v50 = vadd.f32 %v2360_v20, %v2359_v12  ;;  %v2465_v3 = vsel %vm2300_vm13, %v2403_v41, 0.0 }
 0x37b   : > { %v2463_v48 = vsel %vm2300_vm13, %v2402_v9, 0.0  ;;  %2633 = vst.msk [vmem:[%s4134_s13 + $0x78] sm:$0xf] %vm2602_vm14, %v2890_v14 }
 0x37c   : > { %v2363_v11 = vadd.f32 %v2362_v23, %v2361_v50  ;;  %v2464_v58 = vadd.f32 %v2463_v48, %v2462_v29 }
 0x37e   : > { %v2364_v15 = vrot.slane %v2363_v11, 4  ;;  %v2466_v6 = vadd.f32 %v2465_v3, %v2464_v58 }
 0x380   : > { %v2365_v33 = vadd.f32 %v2364_v15, %v2363_v11  ;;  %v2467_v61 = vrot.slane %v2466_v6, 4 }
 0x382   : > { %v2366_v34 = vrot.slane %v2365_v33, 2  ;;  %v2468_v40 = vadd.f32 %v2467_v61, %v2466_v6 }
 0x384   : > { %v2367_v43 = vadd.f32 %v2366_v34, %v2365_v33  ;;  %v2469_v51 = vrot.slane %v2468_v40, 2 }
 0x386   : > { %v2368_v54 = vrot.slane %v2367_v43, 1  ;;  %v2470_v13 = vadd.f32 %v2469_v51, %v2468_v40 }
 0x388   : > { %v2369_v35 = vadd.f32 %v2368_v54, %v2367_v43  ;;  %v2471_v17 = vrot.slane %v2470_v13, 1 }
 0x38a   : > { %2371 = vst.msk [vmem:[%s200_s11] sm:$0x1] %vm2370_vm15, %v2369_v35  ;;  %v2472_v36 = vadd.f32 %v2471_v17, %v2470_v13 }
 0x38b   : > { %3067 = shalt.err (!%p3064_p3)
}
 0x38c   : > { %s3068_s13 = scalar_lea.hbm %s4351_s29, 16  ;;  %s3072_s23 = scalar_lea.hbm %s4430_s3, 32 }
 0x38d   : > { %p3069_p4 = scmp.ne.s32.totalorder %s4351_s29, %s3068_s13  ;;  %p3073_p9 = scmp.lt.u32.totalorder %s4351_s29, %s4430_s3 }
 0x38e   : > { %p3074_p10 = scmp.lt.u32.totalorder %s3072_s23, %s3068_s13  ;;  %p3076_p12 = scmp.lt.u32.totalorder %s3068_s13, %s4351_s29 }
 0x38f   : > { %p3070_p7 = pnand %p3069_p4, %p3224_p5 }
 0x390   : > { %p3075_p11 = por %p3074_p10, %p3073_p9 }
 0x391   : > { %p3071_p8 = pneg %p3070_p7 }
 0x392   : > { %p3077_p13 = por %p3076_p12, %p3075_p11 }
 0x394   : > { %p3078_p0 = pnand %p3077_p13, %p3071_p8 }
 0x396   : > { %3081 = shalt.err (!%p3078_p0)
}
 0x397   : > { %3001 = dma.vmem_to_hbm [thread:$0]  (%p3224_p5), %s4353_s14, 16, %s4351_s29, %s2641_s7   ;;  %2473 = vst.msk [vmem:[%s206_s20] sm:$0x1] %vm2370_vm15, %v2472_v36 }
 0x398   : > { %s2645_s30 = scalar_lea.sflag [#allocation7], %s4341_s27  ;;  %s3082_s12 = scalar_lea.vmem %s4361_s22, 16 }
 0x399   : > { %p3083_p1 = scmp.ne.s32.totalorder %s4361_s22, %s3082_s12  ;;  %s3160_s5 = smov [#allocation6]  }
 0x39a   : > { %s3086_s8 = sshll.u32 %s3160_s5, 4  ;;  %s3087_s8 = int_to_ptr.vmem [resolvable:$false] %s3086_s8 }
 0x39b   : > { %p3084_p2 = pnand %p3083_p1, %p3224_p5  ;;  %s3088_s9 = scalar_lea.vmem %s3087_s8, 32 }
 0x39c   : > { %p3089_p4 = scmp.lt.s32.totalorder %s4361_s22, %s3087_s8  ;;  %p3090_p7 = scmp.lt.s32.totalorder %s3088_s9, %s3082_s12 }
 0x39d   : > { %p3085_p3 = pneg %p3084_p2 }
 0x39e   : > { %p3091_p8 = por %p3090_p7, %p3089_p4 }
 0x3a0   : > { %p3092_p9 = pnand %p3091_p8, %p3085_p3 }
 0x3a2   : > { %3095 = shalt.err (!%p3092_p9)
}
 0x3a3   : > { %s3096_s27 = scalar_lea.hbm %s4359_s6, 16  ;;  %s3100_s29 = scalar_lea.hbm %s4431_s4, 32 }
 0x3a4   : > { %p3097_p10 = scmp.ne.s32.totalorder %s4359_s6, %s3096_s27  ;;  %p3101_p13 = scmp.lt.u32.totalorder %s4359_s6, %s4431_s4 }
 0x3a5   : > { %p3102_p0 = scmp.lt.u32.totalorder %s3100_s29, %s3096_s27  ;;  %p3104_p2 = scmp.lt.u32.totalorder %s3096_s27, %s4359_s6 }
 0x3a6   : > { %p3098_p11 = pnand %p3097_p10, %p3224_p5 }
 0x3a7   : > { %p3103_p1 = por %p3102_p0, %p3101_p13 }
 0x3a8   : > { %p3099_p12 = pneg %p3098_p11 }
 0x3a9   : > { %p3105_p3 = por %p3104_p2, %p3103_p1 }
 0x3ab   : > { %p3106_p4 = pnand %p3105_p3, %p3099_p12 }
 0x3ad   : > { %3109 = shalt.err (!%p3106_p4)
}
 0x3ae   : > { %3002 = dma.vmem_to_hbm [thread:$0]  (%p3224_p5), %s4361_s22, 16, %s4359_s6, %s2645_s30  }
 0x3af PF: > { %p3012_p7 = scmp.ge.s32.totalorder %s3148_s18, 2  ;;  %s2693_s10 = sand.u32 1, %s3136_s15  }
 0x3b0   : > { %s2694_s11 = scalar_lea.sflag [#allocation5], %s2693_s10 }
 0x3b1   : > { %p3006_p8 = pnand %p3012_p7, %p3228_p6 }
 0x3b3   : > { %3127 = dma.done.wait (!%p3006_p8), %s2694_s11, 16  }
 0x3b4   : > { %3129 = vsyncadd (!%p3006_p8), %s2694_s11, 4294967280  ;;  %s2702_s23 = scalar_lea.sflag [#allocation7], %s2693_s10 }
 0x3b5   : > { %3131 = dma.done.wait (!%p3006_p8), %s2702_s23, 16  }
 0x3b6   : > { %3133 = vsyncadd (!%p3006_p8), %s2702_s23, 4294967280  ;;  %p18_p5 = scmp.ge.s32.totalorder %s3211_s21, 4   ;;  %s4434_s15 = smov %s3140_s16 }
 0x3b7   : > { %s4435_s16 = smov %s3144_s17  ;;  %s4436_s17 = smov %s3222_s24 }
 0x3b8   : > { %s4437_s18 = smov %s3211_s21  ;;  %20 = sbr.rel (!%p18_p5) target bundleno = 5 (0x5), region = 95 }
 0x3bf   :  { %2706 = vsyncpa [#allocation5], 1 }
 0x3c0   :  { %2708 = vsyncpa [#allocation5 + $0x1], 1 }
 0x3c1   :  { %2709 = vsyncpa [#allocation7], 1 }
 0x3c2   :  { %2711 = vsyncpa [#allocation7 + $0x1], 1 }

</bundles_post_ra>
